<compile_context>
chip_gen: v6e
topology: v6e:2x2x1
jax: 0.10.0
libtpu: 0.0.40
codegen_flags: <defaults>
</compile_context>

<pallas_src>
import jax
import jax.numpy as jnp
from jax.experimental import pallas as pl
from jax.experimental.pallas import tpu as pltpu

# ----------------------- synthetic scene graph / config -----------------------
NUM_NODES = 8
SRC = (0, 0, 1, 1, 2, 2, 3)
DST = (1, 2, 3, 4, 5, 6, 7)

GRAPH_FEATURE_SIZE = 28     # node_feature_size
GRAPH_HIDDEN = 256          # graph_hidden_layers_width
GRAPH_EMBEDDING = 32        # graph_embedding_size
LOCAL_STEPS = 2
GLOBAL_STEPS = 4
VECTOR_SIZE = 3             # features['vector'][:, 9:12]
LAST_LAYER_PI = 512
LAST_LAYER_VF = 512

# Per destination node: [self] + in-edge sources (static topology, unrolled in-kernel).
_IN_EDGES = tuple(
    tuple([d] + [s for s, dd in zip(SRC, DST) if dd == d]) for d in range(NUM_NODES)
)


# --------------------------------- kernel -------------------------------------
def custom_network_kernel(feats_ref, vec_ref,
                          wl0_ref, bl0_ref, wl1_ref, bl1_ref,
                          wg0_ref, bg0_ref, wg1_ref, bg1_ref,
                          wg2_ref, bg2_ref, wg3_ref, bg3_ref,
                          wemb_ref, bemb_ref,
                          wh_v_ref, wh_e_ref, bh_ref,
                          pi_ref, vf_ref):
    f32, bf16 = jnp.float32, jnp.bfloat16
    N = NUM_NODES

    def dense_relu(x, w, b):
        # bf16 MXU operands, f32 accumulation + bias + ReLU, downcast so the
        # activation carried between layers stays bf16 (halves VMEM traffic).
        y = jnp.dot(x, w, preferred_element_type=f32) + b
        return jnp.maximum(y, 0.0).astype(bf16)

    def gnn_layer(slabs, w_ref, b_ref):
        # Static topology (7 directed edges + 8 self loops) unrolled as bf16 VPU
        # adds; one per-node (TB, C) dot each.  No concat / re-slice passes over
        # the hidden activation -- results stay as per-node slabs.
        w, b = w_ref[...], b_ref[...]
        out = []
        for srcs in _IN_EDGES:
            m = slabs[srcs[0]]
            for s in srcs[1:]:
                m = m + slabs[s]
            out.append(dense_relu(m, w, b))
        return out

    # ---- local message-passing steps (local_steps = 2), bf16 activation carry ----
    slabs = [feats_ref[n] for n in range(N)]            # each (TB, F) bf16
    slabs = gnn_layer(slabs, wl0_ref, bl0_ref)          # 8 x (TB, 256) bf16
    slabs = gnn_layer(slabs, wl1_ref, bl1_ref)          # 8 x (TB, 256) bf16

    # ---- node aggregation per graph (agg_style='node', mean over N nodes) ----
    g = slabs[0]
    for n in range(1, N):
        g = g + slabs[n]
    g = g * (1.0 / N)                                   # (TB, 256) bf16

    # ---- global steps (global_steps = 4) ----
    for w_ref, b_ref in ((wg0_ref, bg0_ref), (wg1_ref, bg1_ref),
                         (wg2_ref, bg2_ref), (wg3_ref, bg3_ref)):
        g = dense_relu(g, w_ref[...], b_ref[...])

    # ---- graph embedding (Linear, no activation) ----
    emb = jnp.dot(g, wemb_ref[...], preferred_element_type=f32) + bemb_ref[...]

    # ---- fused policy/value heads on concat([vector[:,9:12], emb]) ----
    # emb part: one lane-dense (K=32, N=1024) bf16 dot on the MXU.
    # vec part: 3 VPU broadcast FMAs instead of a K=3 f32 MXU matmul.
    vec = vec_ref[...]                                  # (TB, 3) f32
    head = bh_ref[...] + jnp.dot(emb.astype(bf16), wh_e_ref[...],
                                 preferred_element_type=f32)
    for k in range(VECTOR_SIZE):
        head = head + vec[:, k:k + 1] * wh_v_ref[k:k + 1, :]
    head = jnp.maximum(head, 0.0)                       # (TB, 1024) f32
    pi_ref[...] = head[:, :LAST_LAYER_PI]
    vf_ref[...] = head[:, LAST_LAYER_PI:]


# ------------------------------ wrapper / glue ---------------------------------
def _round_up(x, m):
    return (x + m - 1) // m * m


def prepare_params(params):
    """One-time weight preparation, hoisted off the per-call critical path:
    bf16 casts for all MXU weight operands and fusion of the policy/value head
    weights into a single 1024-wide set (concat realised as split vec/emb weights)."""
    bf16, f32 = jnp.bfloat16, jnp.float32
    p = {}
    for k in ('wl0', 'wl1', 'wg0', 'wg1', 'wg2', 'wg3', 'wemb'):
        p[k] = params[k].astype(bf16)
    for k in ('bl0', 'bl1', 'bg0', 'bg1', 'bg2', 'bg3', 'bemb'):
        p[k] = params[k].astype(f32)
    p['wh_v'] = jnp.concatenate([params['wpi_v'], params['wvf_v']], axis=1)              # (3, 1024) f32
    p['wh_e'] = jnp.concatenate([params['wpi_e'], params['wvf_e']], axis=1).astype(bf16)  # (32, 1024) bf16
    p['bh'] = jnp.concatenate([params['bpi'], params['bvf']], axis=1)                     # (1, 1024) f32
    return p


def _forward_impl(node_feats, vector, prepared, *, tb_max=512, core_parallel=False):
    """node_feats: (B, N, 28) per-graph node features; vector: (B, 26).
    `prepared` is the output of prepare_params()."""
    B, N, F = node_feats.shape
    assert N == NUM_NODES and F == GRAPH_FEATURE_SIZE

    # Batch tile: multiple of 8 sublanes; default 512 fills the 256-wide MXU and
    # amortizes per-grid-step overhead (use tb_max=256 on v5e).
    TB = min(tb_max, _round_up(B, 8))
    B_pad = _round_up(B, TB)

    # Layout plumbing (outside the kernel): node-major (N, B, F) so every per-node
    # slab is a contiguous, sublane-aligned (TB, F) block inside the kernel.
    feats = jnp.transpose(node_feats.astype(jnp.bfloat16), (1, 0, 2))   # (N, B, F)
    vec3 = vector[:, 9:12].astype(jnp.float32)                          # (B, 3)
    if B_pad != B:
        feats = jnp.pad(feats, ((0, 0), (0, B_pad - B), (0, 0)))
        vec3 = jnp.pad(vec3, ((0, B_pad - B), (0, 0)))

    inputs = (feats, vec3,
              prepared['wl0'], prepared['bl0'], prepared['wl1'], prepared['bl1'],
              prepared['wg0'], prepared['bg0'], prepared['wg1'], prepared['bg1'],
              prepared['wg2'], prepared['bg2'], prepared['wg3'], prepared['bg3'],
              prepared['wemb'], prepared['bemb'],
              prepared['wh_v'], prepared['wh_e'], prepared['bh'])

    def resident(x):
        # Weights: VMEM-resident across the whole batch grid (constant index_map).
        return pl.BlockSpec(x.shape, lambda i, _nd=x.ndim: (0,) * _nd)

    in_specs = [
        pl.BlockSpec((N, TB, F), lambda i: (0, i, 0)),          # feats: batch-tiled
        pl.BlockSpec((TB, VECTOR_SIZE), lambda i: (i, 0)),      # vec:   batch-tiled
    ] + [resident(x) for x in inputs[2:]]

    out_specs = (pl.BlockSpec((TB, LAST_LAYER_PI), lambda i: (i, 0)),
                 pl.BlockSpec((TB, LAST_LAYER_VF), lambda i: (i, 0)))
    out_shape = (jax.ShapeDtypeStruct((B_pad, LAST_LAYER_PI), jnp.float32),
                 jax.ShapeDtypeStruct((B_pad, LAST_LAYER_VF), jnp.float32))

    # core_parallel=True: explicit dual-TensorCore sharding of the batch axis (v7x).
    batch_sem = pltpu.CORE_PARALLEL if core_parallel else "parallel"

    pi, vf = pl.pallas_call(
        custom_network_kernel,
        grid=(B_pad // TB,),
        in_specs=in_specs,
        out_specs=out_specs,
        out_shape=out_shape,
        compiler_params=pltpu.CompilerParams(
            dimension_semantics=(batch_sem,),
            vmem_limit_bytes=64 * 1024 * 1024),
    )(*inputs)
    return pi[:B], vf[:B]


custom_network_forward = jax.jit(_forward_impl,
                                 static_argnames=("tb_max", "core_parallel"))


# ------------------------------ params init -----------------------------------
def _linear_init(key, fan_in, shape):
    bound = 1.0 / jnp.sqrt(jnp.float32(fan_in))
    return jax.random.uniform(key, shape, jnp.float32, -bound, bound)


def init_params(key):
    ks = jax.random.split(key, 32)
    p = {}
    p['wl0'] = _linear_init(ks[0], GRAPH_FEATURE_SIZE, (GRAPH_FEATURE_SIZE, GRAPH_HIDDEN))
    p['bl0'] = _linear_init(ks[1], GRAPH_FEATURE_SIZE, (1, GRAPH_HIDDEN))
    p['wl1'] = _linear_init(ks[2], GRAPH_HIDDEN, (GRAPH_HIDDEN, GRAPH_HIDDEN))
    p['bl1'] = _linear_init(ks[3], GRAPH_HIDDEN, (1, GRAPH_HIDDEN))
    for i in range(GLOBAL_STEPS):
        p[f'wg{i}'] = _linear_init(ks[4 + 2 * i], GRAPH_HIDDEN, (GRAPH_HIDDEN, GRAPH_HIDDEN))
        p[f'bg{i}'] = _linear_init(ks[5 + 2 * i], GRAPH_HIDDEN, (1, GRAPH_HIDDEN))
    p['wemb'] = _linear_init(ks[12], GRAPH_HIDDEN, (GRAPH_HIDDEN, GRAPH_EMBEDDING))
    p['bemb'] = _linear_init(ks[13], GRAPH_HIDDEN, (1, GRAPH_EMBEDDING))
    comb = VECTOR_SIZE + GRAPH_EMBEDDING
    p['wpi_v'] = _linear_init(ks[14], comb, (VECTOR_SIZE, LAST_LAYER_PI))
    p['wpi_e'] = _linear_init(ks[15], comb, (GRAPH_EMBEDDING, LAST_LAYER_PI))
    p['bpi'] = _linear_init(ks[16], comb, (1, LAST_LAYER_PI))
    p['wvf_v'] = _linear_init(ks[17], comb, (VECTOR_SIZE, LAST_LAYER_VF))
    p['wvf_e'] = _linear_init(ks[18], comb, (GRAPH_EMBEDDING, LAST_LAYER_VF))
    p['bvf'] = _linear_init(ks[19], comb, (1, LAST_LAYER_VF))
    return p


# ------------------------------- reference ------------------------------------
def reference_forward(node_feats, vector, params):
    """Pure-JAX reference mirroring the kernel's mixed precision: bf16 activation
    carry between layers, bf16 MXU operands, f32 accumulation / bias / ReLU / head."""
    f32, bf16 = jnp.float32, jnp.bfloat16
    B, N, F = node_feats.shape

    def dense_relu(x, wk, bk):
        y = jnp.dot(x, params[wk].astype(bf16), preferred_element_type=f32) + params[bk]
        return jnp.maximum(y, 0.0).astype(bf16)

    def message_pass(h):  # h: (B, N, C) bf16 ; directed edges + self loops
        outs = []
        for srcs in _IN_EDGES:
            m = h[:, srcs[0]]
            for s in srcs[1:]:
                m = m + h[:, s]
            outs.append(m)
        return jnp.stack(outs, axis=1)

    h = node_feats.astype(bf16)                                      # (B, N, F)
    h = dense_relu(message_pass(h), 'wl0', 'bl0')                    # (B, N, 256)
    h = dense_relu(message_pass(h), 'wl1', 'bl1')                    # (B, N, 256)
    g = h[:, 0]
    for n in range(1, N):
        g = g + h[:, n]
    g = g * (1.0 / N)                                                # (B, 256) bf16
    for i in range(GLOBAL_STEPS):
        g = dense_relu(g, f'wg{i}', f'bg{i}')
    emb = jnp.dot(g, params['wemb'].astype(bf16), preferred_element_type=f32) + params['bemb']
    vec3 = vector[:, 9:12].astype(f32)

    def head(wv, we, b):
        acc = params[b] + jnp.dot(emb.astype(bf16), params[we].astype(bf16),
                                  preferred_element_type=f32)
        for k in range(VECTOR_SIZE):
            acc = acc + vec3[:, k:k + 1] * params[wv][k:k + 1, :]
        return jnp.maximum(acc, 0.0)

    return head('wpi_v', 'wpi_e', 'bpi'), head('wvf_v', 'wvf_e', 'bvf')


# ---------------------------------- main ---------------------------------------
if __name__ == "__main__":
    key = jax.random.PRNGKey(0)
    k_feat, k_vec, k_param = jax.random.split(key, 3)

    B = 2
    node_feats = jax.random.normal(k_feat, (B, NUM_NODES, GRAPH_FEATURE_SIZE), jnp.float32)
    vector = jax.random.normal(k_vec, (B, 26), jnp.float32)
    params = init_params(k_param)

    # One-time weight prep (kept off the per-call critical path).
    prepared = jax.block_until_ready(prepare_params(params))

    pi, vf = jax.block_until_ready(custom_network_forward(node_feats, vector, prepared))

    pi_ref, vf_ref = reference_forward(node_feats, vector, params)
    assert pi.shape == (B, LAST_LAYER_PI) and vf.shape == (B, LAST_LAYER_VF)
    assert jnp.allclose(pi, pi_ref, atol=2e-2, rtol=2e-2)
    assert jnp.allclose(vf, vf_ref, atol=2e-2, rtol=2e-2)

    print("KERNEL_OK")
</pallas_src>

<mosaic_0001>
module attributes {stable_mosaic.version = 11 : i64} {
  func.func @custom_network_kernel(%arg0: i32, %arg1: memref<8x8x28xbf16, #tpu.memory_space<vmem>>, %arg2: memref<8x3xf32, #tpu.memory_space<vmem>>, %arg3: memref<28x256xbf16, #tpu.memory_space<vmem>>, %arg4: memref<1x256xf32, #tpu.memory_space<vmem>>, %arg5: memref<256x256xbf16, #tpu.memory_space<vmem>>, %arg6: memref<1x256xf32, #tpu.memory_space<vmem>>, %arg7: memref<256x256xbf16, #tpu.memory_space<vmem>>, %arg8: memref<1x256xf32, #tpu.memory_space<vmem>>, %arg9: memref<256x256xbf16, #tpu.memory_space<vmem>>, %arg10: memref<1x256xf32, #tpu.memory_space<vmem>>, %arg11: memref<256x256xbf16, #tpu.memory_space<vmem>>, %arg12: memref<1x256xf32, #tpu.memory_space<vmem>>, %arg13: memref<256x256xbf16, #tpu.memory_space<vmem>>, %arg14: memref<1x256xf32, #tpu.memory_space<vmem>>, %arg15: memref<256x32xbf16, #tpu.memory_space<vmem>>, %arg16: memref<1x32xf32, #tpu.memory_space<vmem>>, %arg17: memref<3x1024xf32, #tpu.memory_space<vmem>>, %arg18: memref<32x1024xbf16, #tpu.memory_space<vmem>>, %arg19: memref<1x1024xf32, #tpu.memory_space<vmem>>, %arg20: memref<8x512xf32, #tpu.memory_space<vmem>>, %arg21: memref<8x512xf32, #tpu.memory_space<vmem>>) attributes {dimension_semantics = [#tpu.dimension_semantics<parallel>], iteration_bounds = array<i64: 1>, scalar_prefetch = 0 : i64, scratch_operands = 0 : i64, tpu.core_type = #tpu.core_type<tc>, window_params = [{transform_indices = @transform_0, window_bounds = array<i64: 8, 8, 28>}, {transform_indices = @transform_1, window_bounds = array<i64: 8, 3>}, {pipeline_mode = #tpu.pipeline_mode<synchronous>, transform_indices = @transform_2, window_bounds = array<i64: 28, 256>}, {pipeline_mode = #tpu.pipeline_mode<synchronous>, transform_indices = @transform_3, window_bounds = array<i64: 1, 256>}, {pipeline_mode = #tpu.pipeline_mode<synchronous>, transform_indices = @transform_4, window_bounds = array<i64: 256, 256>}, {pipeline_mode = #tpu.pipeline_mode<synchronous>, transform_indices = @transform_5, window_bounds = array<i64: 1, 256>}, {pipeline_mode = #tpu.pipeline_mode<synchronous>, transform_indices = @transform_6, window_bounds = array<i64: 256, 256>}, {pipeline_mode = #tpu.pipeline_mode<synchronous>, transform_indices = @transform_7, window_bounds = array<i64: 1, 256>}, {pipeline_mode = #tpu.pipeline_mode<synchronous>, transform_indices = @transform_8, window_bounds = array<i64: 256, 256>}, {pipeline_mode = #tpu.pipeline_mode<synchronous>, transform_indices = @transform_9, window_bounds = array<i64: 1, 256>}, {pipeline_mode = #tpu.pipeline_mode<synchronous>, transform_indices = @transform_10, window_bounds = array<i64: 256, 256>}, {pipeline_mode = #tpu.pipeline_mode<synchronous>, transform_indices = @transform_11, window_bounds = array<i64: 1, 256>}, {pipeline_mode = #tpu.pipeline_mode<synchronous>, transform_indices = @transform_12, window_bounds = array<i64: 256, 256>}, {pipeline_mode = #tpu.pipeline_mode<synchronous>, transform_indices = @transform_13, window_bounds = array<i64: 1, 256>}, {pipeline_mode = #tpu.pipeline_mode<synchronous>, transform_indices = @transform_14, window_bounds = array<i64: 256, 32>}, {pipeline_mode = #tpu.pipeline_mode<synchronous>, transform_indices = @transform_15, window_bounds = array<i64: 1, 32>}, {pipeline_mode = #tpu.pipeline_mode<synchronous>, transform_indices = @transform_16, window_bounds = array<i64: 3, 1024>}, {pipeline_mode = #tpu.pipeline_mode<synchronous>, transform_indices = @transform_17, window_bounds = array<i64: 32, 1024>}, {pipeline_mode = #tpu.pipeline_mode<synchronous>, transform_indices = @transform_18, window_bounds = array<i64: 1, 1024>}, {transform_indices = @transform_19, window_bounds = array<i64: 8, 512>}, {transform_indices = @transform_20, window_bounds = array<i64: 8, 512>}]} {
    %c0 = arith.constant 0 : index
    %c0_0 = arith.constant 0 : index
    %c0_1 = arith.constant 0 : index
    %0 = vector.load %arg1[%c0, %c0_0, %c0_1] : memref<8x8x28xbf16, #tpu.memory_space<vmem>>, vector<1x8x28xbf16>
    %1 = vector.shape_cast %0 : vector<1x8x28xbf16> to vector<8x28xbf16>
    %c1 = arith.constant 1 : index
    %c0_2 = arith.constant 0 : index
    %c0_3 = arith.constant 0 : index
    %2 = vector.load %arg1[%c1, %c0_2, %c0_3] : memref<8x8x28xbf16, #tpu.memory_space<vmem>>, vector<1x8x28xbf16>
    %3 = vector.shape_cast %2 : vector<1x8x28xbf16> to vector<8x28xbf16>
    %c2 = arith.constant 2 : index
    %c0_4 = arith.constant 0 : index
    %c0_5 = arith.constant 0 : index
    %4 = vector.load %arg1[%c2, %c0_4, %c0_5] : memref<8x8x28xbf16, #tpu.memory_space<vmem>>, vector<1x8x28xbf16>
    %5 = vector.shape_cast %4 : vector<1x8x28xbf16> to vector<8x28xbf16>
    %c3 = arith.constant 3 : index
    %c0_6 = arith.constant 0 : index
    %c0_7 = arith.constant 0 : index
    %6 = vector.load %arg1[%c3, %c0_6, %c0_7] : memref<8x8x28xbf16, #tpu.memory_space<vmem>>, vector<1x8x28xbf16>
    %7 = vector.shape_cast %6 : vector<1x8x28xbf16> to vector<8x28xbf16>
    %c4 = arith.constant 4 : index
    %c0_8 = arith.constant 0 : index
    %c0_9 = arith.constant 0 : index
    %8 = vector.load %arg1[%c4, %c0_8, %c0_9] : memref<8x8x28xbf16, #tpu.memory_space<vmem>>, vector<1x8x28xbf16>
    %9 = vector.shape_cast %8 : vector<1x8x28xbf16> to vector<8x28xbf16>
    %c5 = arith.constant 5 : index
    %c0_10 = arith.constant 0 : index
    %c0_11 = arith.constant 0 : index
    %10 = vector.load %arg1[%c5, %c0_10, %c0_11] : memref<8x8x28xbf16, #tpu.memory_space<vmem>>, vector<1x8x28xbf16>
    %11 = vector.shape_cast %10 : vector<1x8x28xbf16> to vector<8x28xbf16>
    %c6 = arith.constant 6 : index
    %c0_12 = arith.constant 0 : index
    %c0_13 = arith.constant 0 : index
    %12 = vector.load %arg1[%c6, %c0_12, %c0_13] : memref<8x8x28xbf16, #tpu.memory_space<vmem>>, vector<1x8x28xbf16>
    %13 = vector.shape_cast %12 : vector<1x8x28xbf16> to vector<8x28xbf16>
    %c7 = arith.constant 7 : index
    %c0_14 = arith.constant 0 : index
    %c0_15 = arith.constant 0 : index
    %14 = vector.load %arg1[%c7, %c0_14, %c0_15] : memref<8x8x28xbf16, #tpu.memory_space<vmem>>, vector<1x8x28xbf16>
    %15 = vector.shape_cast %14 : vector<1x8x28xbf16> to vector<8x28xbf16>
    %c0_16 = arith.constant 0 : index
    %c0_17 = arith.constant 0 : index
    %16 = vector.load %arg3[%c0_16, %c0_17] : memref<28x256xbf16, #tpu.memory_space<vmem>>, vector<28x256xbf16>
    %c0_18 = arith.constant 0 : index
    %c0_19 = arith.constant 0 : index
    %17 = vector.load %arg4[%c0_18, %c0_19] : memref<1x256xf32, #tpu.memory_space<vmem>>, vector<1x256xf32>
    %cst = arith.constant dense<0.000000e+00> : vector<8x256xf32>
    %18 = tpu.matmul %1, %16, %cst {dimension_numbers = #tpu.dot_dimension_numbers<[1], [0], [0], [1], [0, 0, 1, 1], [], []>} : vector<8x28xbf16>, vector<28x256xbf16>, vector<8x256xf32> -> vector<8x256xf32>
    %19 = vector.broadcast %17 : vector<1x256xf32> to vector<8x256xf32>
    %20 = arith.addf %18, %19 : vector<8x256xf32>
    %cst_20 = arith.constant 0.000000e+00 : f32
    %21 = vector.broadcast %cst_20 : f32 to vector<8x256xf32>
    %22 = arith.maximumf %20, %21 : vector<8x256xf32>
    %23 = arith.truncf %22 : vector<8x256xf32> to vector<8x256xbf16>
    %24 = arith.addf %3, %1 : vector<8x28xbf16>
    %cst_21 = arith.constant dense<0.000000e+00> : vector<8x256xf32>
    %25 = tpu.matmul %24, %16, %cst_21 {dimension_numbers = #tpu.dot_dimension_numbers<[1], [0], [0], [1], [0, 0, 1, 1], [], []>} : vector<8x28xbf16>, vector<28x256xbf16>, vector<8x256xf32> -> vector<8x256xf32>
    %26 = vector.broadcast %17 : vector<1x256xf32> to vector<8x256xf32>
    %27 = arith.addf %25, %26 : vector<8x256xf32>
    %cst_22 = arith.constant 0.000000e+00 : f32
    %28 = vector.broadcast %cst_22 : f32 to vector<8x256xf32>
    %29 = arith.maximumf %27, %28 : vector<8x256xf32>
    %30 = arith.truncf %29 : vector<8x256xf32> to vector<8x256xbf16>
    %31 = arith.addf %5, %1 : vector<8x28xbf16>
    %cst_23 = arith.constant dense<0.000000e+00> : vector<8x256xf32>
    %32 = tpu.matmul %31, %16, %cst_23 {dimension_numbers = #tpu.dot_dimension_numbers<[1], [0], [0], [1], [0, 0, 1, 1], [], []>} : vector<8x28xbf16>, vector<28x256xbf16>, vector<8x256xf32> -> vector<8x256xf32>
    %33 = vector.broadcast %17 : vector<1x256xf32> to vector<8x256xf32>
    %34 = arith.addf %32, %33 : vector<8x256xf32>
    %cst_24 = arith.constant 0.000000e+00 : f32
    %35 = vector.broadcast %cst_24 : f32 to vector<8x256xf32>
    %36 = arith.maximumf %34, %35 : vector<8x256xf32>
    %37 = arith.truncf %36 : vector<8x256xf32> to vector<8x256xbf16>
    %38 = arith.addf %7, %3 : vector<8x28xbf16>
    %cst_25 = arith.constant dense<0.000000e+00> : vector<8x256xf32>
    %39 = tpu.matmul %38, %16, %cst_25 {dimension_numbers = #tpu.dot_dimension_numbers<[1], [0], [0], [1], [0, 0, 1, 1], [], []>} : vector<8x28xbf16>, vector<28x256xbf16>, vector<8x256xf32> -> vector<8x256xf32>
    %40 = vector.broadcast %17 : vector<1x256xf32> to vector<8x256xf32>
    %41 = arith.addf %39, %40 : vector<8x256xf32>
    %cst_26 = arith.constant 0.000000e+00 : f32
    %42 = vector.broadcast %cst_26 : f32 to vector<8x256xf32>
    %43 = arith.maximumf %41, %42 : vector<8x256xf32>
    %44 = arith.truncf %43 : vector<8x256xf32> to vector<8x256xbf16>
    %45 = arith.addf %9, %3 : vector<8x28xbf16>
    %cst_27 = arith.constant dense<0.000000e+00> : vector<8x256xf32>
    %46 = tpu.matmul %45, %16, %cst_27 {dimension_numbers = #tpu.dot_dimension_numbers<[1], [0], [0], [1], [0, 0, 1, 1], [], []>} : vector<8x28xbf16>, vector<28x256xbf16>, vector<8x256xf32> -> vector<8x256xf32>
    %47 = vector.broadcast %17 : vector<1x256xf32> to vector<8x256xf32>
    %48 = arith.addf %46, %47 : vector<8x256xf32>
    %cst_28 = arith.constant 0.000000e+00 : f32
    %49 = vector.broadcast %cst_28 : f32 to vector<8x256xf32>
    %50 = arith.maximumf %48, %49 : vector<8x256xf32>
    %51 = arith.truncf %50 : vector<8x256xf32> to vector<8x256xbf16>
    %52 = arith.addf %11, %5 : vector<8x28xbf16>
    %cst_29 = arith.constant dense<0.000000e+00> : vector<8x256xf32>
    %53 = tpu.matmul %52, %16, %cst_29 {dimension_numbers = #tpu.dot_dimension_numbers<[1], [0], [0], [1], [0, 0, 1, 1], [], []>} : vector<8x28xbf16>, vector<28x256xbf16>, vector<8x256xf32> -> vector<8x256xf32>
    %54 = vector.broadcast %17 : vector<1x256xf32> to vector<8x256xf32>
    %55 = arith.addf %53, %54 : vector<8x256xf32>
    %cst_30 = arith.constant 0.000000e+00 : f32
    %56 = vector.broadcast %cst_30 : f32 to vector<8x256xf32>
    %57 = arith.maximumf %55, %56 : vector<8x256xf32>
    %58 = arith.truncf %57 : vector<8x256xf32> to vector<8x256xbf16>
    %59 = arith.addf %13, %5 : vector<8x28xbf16>
    %cst_31 = arith.constant dense<0.000000e+00> : vector<8x256xf32>
    %60 = tpu.matmul %59, %16, %cst_31 {dimension_numbers = #tpu.dot_dimension_numbers<[1], [0], [0], [1], [0, 0, 1, 1], [], []>} : vector<8x28xbf16>, vector<28x256xbf16>, vector<8x256xf32> -> vector<8x256xf32>
    %61 = vector.broadcast %17 : vector<1x256xf32> to vector<8x256xf32>
    %62 = arith.addf %60, %61 : vector<8x256xf32>
    %cst_32 = arith.constant 0.000000e+00 : f32
    %63 = vector.broadcast %cst_32 : f32 to vector<8x256xf32>
    %64 = arith.maximumf %62, %63 : vector<8x256xf32>
    %65 = arith.truncf %64 : vector<8x256xf32> to vector<8x256xbf16>
    %66 = arith.addf %15, %7 : vector<8x28xbf16>
    %cst_33 = arith.constant dense<0.000000e+00> : vector<8x256xf32>
    %67 = tpu.matmul %66, %16, %cst_33 {dimension_numbers = #tpu.dot_dimension_numbers<[1], [0], [0], [1], [0, 0, 1, 1], [], []>} : vector<8x28xbf16>, vector<28x256xbf16>, vector<8x256xf32> -> vector<8x256xf32>
    %68 = vector.broadcast %17 : vector<1x256xf32> to vector<8x256xf32>
    %69 = arith.addf %67, %68 : vector<8x256xf32>
    %cst_34 = arith.constant 0.000000e+00 : f32
    %70 = vector.broadcast %cst_34 : f32 to vector<8x256xf32>
    %71 = arith.maximumf %69, %70 : vector<8x256xf32>
    %72 = arith.truncf %71 : vector<8x256xf32> to vector<8x256xbf16>
    %c0_35 = arith.constant 0 : index
    %c0_36 = arith.constant 0 : index
    %73 = vector.load %arg5[%c0_35, %c0_36] : memref<256x256xbf16, #tpu.memory_space<vmem>>, vector<256x256xbf16>
    %c0_37 = arith.constant 0 : index
    %c0_38 = arith.constant 0 : index
    %74 = vector.load %arg6[%c0_37, %c0_38] : memref<1x256xf32, #tpu.memory_space<vmem>>, vector<1x256xf32>
    %cst_39 = arith.constant dense<0.000000e+00> : vector<8x256xf32>
    %75 = tpu.matmul %23, %73, %cst_39 {dimension_numbers = #tpu.dot_dimension_numbers<[1], [0], [0], [1], [0, 0, 1, 1], [], []>} : vector<8x256xbf16>, vector<256x256xbf16>, vector<8x256xf32> -> vector<8x256xf32>
    %76 = vector.broadcast %74 : vector<1x256xf32> to vector<8x256xf32>
    %77 = arith.addf %75, %76 : vector<8x256xf32>
    %cst_40 = arith.constant 0.000000e+00 : f32
    %78 = vector.broadcast %cst_40 : f32 to vector<8x256xf32>
    %79 = arith.maximumf %77, %78 : vector<8x256xf32>
    %80 = arith.truncf %79 : vector<8x256xf32> to vector<8x256xbf16>
    %81 = arith.addf %30, %23 : vector<8x256xbf16>
    %cst_41 = arith.constant dense<0.000000e+00> : vector<8x256xf32>
    %82 = tpu.matmul %81, %73, %cst_41 {dimension_numbers = #tpu.dot_dimension_numbers<[1], [0], [0], [1], [0, 0, 1, 1], [], []>} : vector<8x256xbf16>, vector<256x256xbf16>, vector<8x256xf32> -> vector<8x256xf32>
    %83 = vector.broadcast %74 : vector<1x256xf32> to vector<8x256xf32>
    %84 = arith.addf %82, %83 : vector<8x256xf32>
    %cst_42 = arith.constant 0.000000e+00 : f32
    %85 = vector.broadcast %cst_42 : f32 to vector<8x256xf32>
    %86 = arith.maximumf %84, %85 : vector<8x256xf32>
    %87 = arith.truncf %86 : vector<8x256xf32> to vector<8x256xbf16>
    %88 = arith.addf %37, %23 : vector<8x256xbf16>
    %cst_43 = arith.constant dense<0.000000e+00> : vector<8x256xf32>
    %89 = tpu.matmul %88, %73, %cst_43 {dimension_numbers = #tpu.dot_dimension_numbers<[1], [0], [0], [1], [0, 0, 1, 1], [], []>} : vector<8x256xbf16>, vector<256x256xbf16>, vector<8x256xf32> -> vector<8x256xf32>
    %90 = vector.broadcast %74 : vector<1x256xf32> to vector<8x256xf32>
    %91 = arith.addf %89, %90 : vector<8x256xf32>
    %cst_44 = arith.constant 0.000000e+00 : f32
    %92 = vector.broadcast %cst_44 : f32 to vector<8x256xf32>
    %93 = arith.maximumf %91, %92 : vector<8x256xf32>
    %94 = arith.truncf %93 : vector<8x256xf32> to vector<8x256xbf16>
    %95 = arith.addf %44, %30 : vector<8x256xbf16>
    %cst_45 = arith.constant dense<0.000000e+00> : vector<8x256xf32>
    %96 = tpu.matmul %95, %73, %cst_45 {dimension_numbers = #tpu.dot_dimension_numbers<[1], [0], [0], [1], [0, 0, 1, 1], [], []>} : vector<8x256xbf16>, vector<256x256xbf16>, vector<8x256xf32> -> vector<8x256xf32>
    %97 = vector.broadcast %74 : vector<1x256xf32> to vector<8x256xf32>
    %98 = arith.addf %96, %97 : vector<8x256xf32>
    %cst_46 = arith.constant 0.000000e+00 : f32
    %99 = vector.broadcast %cst_46 : f32 to vector<8x256xf32>
    %100 = arith.maximumf %98, %99 : vector<8x256xf32>
    %101 = arith.truncf %100 : vector<8x256xf32> to vector<8x256xbf16>
    %102 = arith.addf %51, %30 : vector<8x256xbf16>
    %cst_47 = arith.constant dense<0.000000e+00> : vector<8x256xf32>
    %103 = tpu.matmul %102, %73, %cst_47 {dimension_numbers = #tpu.dot_dimension_numbers<[1], [0], [0], [1], [0, 0, 1, 1], [], []>} : vector<8x256xbf16>, vector<256x256xbf16>, vector<8x256xf32> -> vector<8x256xf32>
    %104 = vector.broadcast %74 : vector<1x256xf32> to vector<8x256xf32>
    %105 = arith.addf %103, %104 : vector<8x256xf32>
    %cst_48 = arith.constant 0.000000e+00 : f32
    %106 = vector.broadcast %cst_48 : f32 to vector<8x256xf32>
    %107 = arith.maximumf %105, %106 : vector<8x256xf32>
    %108 = arith.truncf %107 : vector<8x256xf32> to vector<8x256xbf16>
    %109 = arith.addf %58, %37 : vector<8x256xbf16>
    %cst_49 = arith.constant dense<0.000000e+00> : vector<8x256xf32>
    %110 = tpu.matmul %109, %73, %cst_49 {dimension_numbers = #tpu.dot_dimension_numbers<[1], [0], [0], [1], [0, 0, 1, 1], [], []>} : vector<8x256xbf16>, vector<256x256xbf16>, vector<8x256xf32> -> vector<8x256xf32>
    %111 = vector.broadcast %74 : vector<1x256xf32> to vector<8x256xf32>
    %112 = arith.addf %110, %111 : vector<8x256xf32>
    %cst_50 = arith.constant 0.000000e+00 : f32
    %113 = vector.broadcast %cst_50 : f32 to vector<8x256xf32>
    %114 = arith.maximumf %112, %113 : vector<8x256xf32>
    %115 = arith.truncf %114 : vector<8x256xf32> to vector<8x256xbf16>
    %116 = arith.addf %65, %37 : vector<8x256xbf16>
    %cst_51 = arith.constant dense<0.000000e+00> : vector<8x256xf32>
    %117 = tpu.matmul %116, %73, %cst_51 {dimension_numbers = #tpu.dot_dimension_numbers<[1], [0], [0], [1], [0, 0, 1, 1], [], []>} : vector<8x256xbf16>, vector<256x256xbf16>, vector<8x256xf32> -> vector<8x256xf32>
    %118 = vector.broadcast %74 : vector<1x256xf32> to vector<8x256xf32>
    %119 = arith.addf %117, %118 : vector<8x256xf32>
    %cst_52 = arith.constant 0.000000e+00 : f32
    %120 = vector.broadcast %cst_52 : f32 to vector<8x256xf32>
    %121 = arith.maximumf %119, %120 : vector<8x256xf32>
    %122 = arith.truncf %121 : vector<8x256xf32> to vector<8x256xbf16>
    %123 = arith.addf %72, %44 : vector<8x256xbf16>
    %cst_53 = arith.constant dense<0.000000e+00> : vector<8x256xf32>
    %124 = tpu.matmul %123, %73, %cst_53 {dimension_numbers = #tpu.dot_dimension_numbers<[1], [0], [0], [1], [0, 0, 1, 1], [], []>} : vector<8x256xbf16>, vector<256x256xbf16>, vector<8x256xf32> -> vector<8x256xf32>
    %125 = vector.broadcast %74 : vector<1x256xf32> to vector<8x256xf32>
    %126 = arith.addf %124, %125 : vector<8x256xf32>
    %cst_54 = arith.constant 0.000000e+00 : f32
    %127 = vector.broadcast %cst_54 : f32 to vector<8x256xf32>
    %128 = arith.maximumf %126, %127 : vector<8x256xf32>
    %129 = arith.truncf %128 : vector<8x256xf32> to vector<8x256xbf16>
    %130 = arith.addf %80, %87 : vector<8x256xbf16>
    %131 = arith.addf %130, %94 : vector<8x256xbf16>
    %132 = arith.addf %131, %101 : vector<8x256xbf16>
    %133 = arith.addf %132, %108 : vector<8x256xbf16>
    %134 = arith.addf %133, %115 : vector<8x256xbf16>
    %135 = arith.addf %134, %122 : vector<8x256xbf16>
    %136 = arith.addf %135, %129 : vector<8x256xbf16>
    %cst_55 = arith.constant 1.250000e-01 : bf16
    %137 = vector.broadcast %cst_55 : bf16 to vector<8x256xbf16>
    %138 = arith.mulf %136, %137 : vector<8x256xbf16>
    %c0_56 = arith.constant 0 : index
    %c0_57 = arith.constant 0 : index
    %139 = vector.load %arg7[%c0_56, %c0_57] : memref<256x256xbf16, #tpu.memory_space<vmem>>, vector<256x256xbf16>
    %c0_58 = arith.constant 0 : index
    %c0_59 = arith.constant 0 : index
    %140 = vector.load %arg8[%c0_58, %c0_59] : memref<1x256xf32, #tpu.memory_space<vmem>>, vector<1x256xf32>
    %cst_60 = arith.constant dense<0.000000e+00> : vector<8x256xf32>
    %141 = tpu.matmul %138, %139, %cst_60 {dimension_numbers = #tpu.dot_dimension_numbers<[1], [0], [0], [1], [0, 0, 1, 1], [], []>} : vector<8x256xbf16>, vector<256x256xbf16>, vector<8x256xf32> -> vector<8x256xf32>
    %142 = vector.broadcast %140 : vector<1x256xf32> to vector<8x256xf32>
    %143 = arith.addf %141, %142 : vector<8x256xf32>
    %cst_61 = arith.constant 0.000000e+00 : f32
    %144 = vector.broadcast %cst_61 : f32 to vector<8x256xf32>
    %145 = arith.maximumf %143, %144 : vector<8x256xf32>
    %146 = arith.truncf %145 : vector<8x256xf32> to vector<8x256xbf16>
    %c0_62 = arith.constant 0 : index
    %c0_63 = arith.constant 0 : index
    %147 = vector.load %arg9[%c0_62, %c0_63] : memref<256x256xbf16, #tpu.memory_space<vmem>>, vector<256x256xbf16>
    %c0_64 = arith.constant 0 : index
    %c0_65 = arith.constant 0 : index
    %148 = vector.load %arg10[%c0_64, %c0_65] : memref<1x256xf32, #tpu.memory_space<vmem>>, vector<1x256xf32>
    %cst_66 = arith.constant dense<0.000000e+00> : vector<8x256xf32>
    %149 = tpu.matmul %146, %147, %cst_66 {dimension_numbers = #tpu.dot_dimension_numbers<[1], [0], [0], [1], [0, 0, 1, 1], [], []>} : vector<8x256xbf16>, vector<256x256xbf16>, vector<8x256xf32> -> vector<8x256xf32>
    %150 = vector.broadcast %148 : vector<1x256xf32> to vector<8x256xf32>
    %151 = arith.addf %149, %150 : vector<8x256xf32>
    %cst_67 = arith.constant 0.000000e+00 : f32
    %152 = vector.broadcast %cst_67 : f32 to vector<8x256xf32>
    %153 = arith.maximumf %151, %152 : vector<8x256xf32>
    %154 = arith.truncf %153 : vector<8x256xf32> to vector<8x256xbf16>
    %c0_68 = arith.constant 0 : index
    %c0_69 = arith.constant 0 : index
    %155 = vector.load %arg11[%c0_68, %c0_69] : memref<256x256xbf16, #tpu.memory_space<vmem>>, vector<256x256xbf16>
    %c0_70 = arith.constant 0 : index
    %c0_71 = arith.constant 0 : index
    %156 = vector.load %arg12[%c0_70, %c0_71] : memref<1x256xf32, #tpu.memory_space<vmem>>, vector<1x256xf32>
    %cst_72 = arith.constant dense<0.000000e+00> : vector<8x256xf32>
    %157 = tpu.matmul %154, %155, %cst_72 {dimension_numbers = #tpu.dot_dimension_numbers<[1], [0], [0], [1], [0, 0, 1, 1], [], []>} : vector<8x256xbf16>, vector<256x256xbf16>, vector<8x256xf32> -> vector<8x256xf32>
    %158 = vector.broadcast %156 : vector<1x256xf32> to vector<8x256xf32>
    %159 = arith.addf %157, %158 : vector<8x256xf32>
    %cst_73 = arith.constant 0.000000e+00 : f32
    %160 = vector.broadcast %cst_73 : f32 to vector<8x256xf32>
    %161 = arith.maximumf %159, %160 : vector<8x256xf32>
    %162 = arith.truncf %161 : vector<8x256xf32> to vector<8x256xbf16>
    %c0_74 = arith.constant 0 : index
    %c0_75 = arith.constant 0 : index
    %163 = vector.load %arg13[%c0_74, %c0_75] : memref<256x256xbf16, #tpu.memory_space<vmem>>, vector<256x256xbf16>
    %c0_76 = arith.constant 0 : index
    %c0_77 = arith.constant 0 : index
    %164 = vector.load %arg14[%c0_76, %c0_77] : memref<1x256xf32, #tpu.memory_space<vmem>>, vector<1x256xf32>
    %cst_78 = arith.constant dense<0.000000e+00> : vector<8x256xf32>
    %165 = tpu.matmul %162, %163, %cst_78 {dimension_numbers = #tpu.dot_dimension_numbers<[1], [0], [0], [1], [0, 0, 1, 1], [], []>} : vector<8x256xbf16>, vector<256x256xbf16>, vector<8x256xf32> -> vector<8x256xf32>
    %166 = vector.broadcast %164 : vector<1x256xf32> to vector<8x256xf32>
    %167 = arith.addf %165, %166 : vector<8x256xf32>
    %cst_79 = arith.constant 0.000000e+00 : f32
    %168 = vector.broadcast %cst_79 : f32 to vector<8x256xf32>
    %169 = arith.maximumf %167, %168 : vector<8x256xf32>
    %170 = arith.truncf %169 : vector<8x256xf32> to vector<8x256xbf16>
    %c0_80 = arith.constant 0 : index
    %c0_81 = arith.constant 0 : index
    %171 = vector.load %arg15[%c0_80, %c0_81] : memref<256x32xbf16, #tpu.memory_space<vmem>>, vector<256x32xbf16>
    %cst_82 = arith.constant dense<0.000000e+00> : vector<8x32xf32>
    %172 = tpu.matmul %170, %171, %cst_82 {dimension_numbers = #tpu.dot_dimension_numbers<[1], [0], [0], [1], [0, 0, 1, 1], [], []>} : vector<8x256xbf16>, vector<256x32xbf16>, vector<8x32xf32> -> vector<8x32xf32>
    %c0_83 = arith.constant 0 : index
    %c0_84 = arith.constant 0 : index
    %173 = vector.load %arg16[%c0_83, %c0_84] : memref<1x32xf32, #tpu.memory_space<vmem>>, vector<1x32xf32>
    %174 = vector.broadcast %173 : vector<1x32xf32> to vector<8x32xf32>
    %175 = arith.addf %172, %174 : vector<8x32xf32>
    %c0_85 = arith.constant 0 : index
    %c0_86 = arith.constant 0 : index
    %176 = vector.load %arg2[%c0_85, %c0_86] : memref<8x3xf32, #tpu.memory_space<vmem>>, vector<8x3xf32>
    %c0_87 = arith.constant 0 : index
    %c0_88 = arith.constant 0 : index
    %177 = vector.load %arg19[%c0_87, %c0_88] : memref<1x1024xf32, #tpu.memory_space<vmem>>, vector<1x1024xf32>
    %178 = arith.truncf %175 : vector<8x32xf32> to vector<8x32xbf16>
    %c0_89 = arith.constant 0 : index
    %c0_90 = arith.constant 0 : index
    %179 = vector.load %arg18[%c0_89, %c0_90] : memref<32x1024xbf16, #tpu.memory_space<vmem>>, vector<32x1024xbf16>
    %cst_91 = arith.constant dense<0.000000e+00> : vector<8x1024xf32>
    %180 = tpu.matmul %178, %179, %cst_91 {dimension_numbers = #tpu.dot_dimension_numbers<[1], [0], [0], [1], [0, 0, 1, 1], [], []>} : vector<8x32xbf16>, vector<32x1024xbf16>, vector<8x1024xf32> -> vector<8x1024xf32>
    %181 = vector.broadcast %177 : vector<1x1024xf32> to vector<8x1024xf32>
    %182 = arith.addf %181, %180 : vector<8x1024xf32>
    %183 = vector.extract_strided_slice %176 {offsets = [0, 0], sizes = [8, 1], strides = [1, 1]} : vector<8x3xf32> to vector<8x1xf32>
    %c0_92 = arith.constant 0 : index
    %c0_93 = arith.constant 0 : index
    %184 = vector.load %arg17[%c0_92, %c0_93] : memref<3x1024xf32, #tpu.memory_space<vmem>>, vector<1x1024xf32>
    %185 = vector.broadcast %183 : vector<8x1xf32> to vector<8x1024xf32>
    %186 = vector.broadcast %184 : vector<1x1024xf32> to vector<8x1024xf32>
    %187 = arith.mulf %185, %186 : vector<8x1024xf32>
    %188 = arith.addf %182, %187 : vector<8x1024xf32>
    %189 = vector.extract_strided_slice %176 {offsets = [0, 1], sizes = [8, 1], strides = [1, 1]} : vector<8x3xf32> to vector<8x1xf32>
    %c1_94 = arith.constant 1 : index
    %c0_95 = arith.constant 0 : index
    %190 = vector.load %arg17[%c1_94, %c0_95] : memref<3x1024xf32, #tpu.memory_space<vmem>>, vector<1x1024xf32>
    %191 = vector.broadcast %189 : vector<8x1xf32> to vector<8x1024xf32>
    %192 = vector.broadcast %190 : vector<1x1024xf32> to vector<8x1024xf32>
    %193 = arith.mulf %191, %192 : vector<8x1024xf32>
    %194 = arith.addf %188, %193 : vector<8x1024xf32>
    %195 = vector.extract_strided_slice %176 {offsets = [0, 2], sizes = [8, 1], strides = [1, 1]} : vector<8x3xf32> to vector<8x1xf32>
    %c2_96 = arith.constant 2 : index
    %c0_97 = arith.constant 0 : index
    %196 = vector.load %arg17[%c2_96, %c0_97] : memref<3x1024xf32, #tpu.memory_space<vmem>>, vector<1x1024xf32>
    %197 = vector.broadcast %195 : vector<8x1xf32> to vector<8x1024xf32>
    %198 = vector.broadcast %196 : vector<1x1024xf32> to vector<8x1024xf32>
    %199 = arith.mulf %197, %198 : vector<8x1024xf32>
    %200 = arith.addf %194, %199 : vector<8x1024xf32>
    %cst_98 = arith.constant 0.000000e+00 : f32
    %201 = vector.broadcast %cst_98 : f32 to vector<8x1024xf32>
    %202 = arith.maximumf %200, %201 : vector<8x1024xf32>
    %203 = vector.extract_strided_slice %202 {offsets = [0, 0], sizes = [8, 512], strides = [1, 1]} : vector<8x1024xf32> to vector<8x512xf32>
    %c0_99 = arith.constant 0 : index
    %c0_100 = arith.constant 0 : index
    %204 = vector.load %arg20[%c0_99, %c0_100] : memref<8x512xf32, #tpu.memory_space<vmem>>, vector<8x512xf32>
    tpu.vector_store %arg20[%c0_99, %c0_100], %203 {strides = array<i32>} : memref<8x512xf32, #tpu.memory_space<vmem>>, vector<8x512xf32>,
    %205 = vector.extract_strided_slice %202 {offsets = [0, 512], sizes = [8, 512], strides = [1, 1]} : vector<8x1024xf32> to vector<8x512xf32>
    %c0_101 = arith.constant 0 : index
    %c0_102 = arith.constant 0 : index
    %206 = vector.load %arg21[%c0_101, %c0_102] : memref<8x512xf32, #tpu.memory_space<vmem>>, vector<8x512xf32>
    tpu.vector_store %arg21[%c0_101, %c0_102], %205 {strides = array<i32>} : memref<8x512xf32, #tpu.memory_space<vmem>>, vector<8x512xf32>,
    return
  }
  func.func @transform_0(%arg0: i32) -> (i32, i32, i32) {
    %c0_i32 = arith.constant 0 : i32
    %c0_i32_0 = arith.constant 0 : i32
    %c0_i32_1 = arith.constant 0 : i32
    return %c0_i32, %arg0, %c0_i32_0 : i32, i32, i32
  }
  func.func @transform_1(%arg0: i32) -> (i32, i32) {
    %c0_i32 = arith.constant 0 : i32
    %c0_i32_0 = arith.constant 0 : i32
    return %arg0, %c0_i32 : i32, i32
  }
  func.func @transform_2(%arg0: i32) -> (i32, i32) {
    %c0_i32 = arith.constant 0 : i32
    %c0_i32_0 = arith.constant 0 : i32
    %c0_i32_1 = arith.constant 0 : i32
    return %c0_i32, %c0_i32_0 : i32, i32
  }
  func.func @transform_3(%arg0: i32) -> (i32, i32) {
    %c0_i32 = arith.constant 0 : i32
    %c0_i32_0 = arith.constant 0 : i32
    %c0_i32_1 = arith.constant 0 : i32
    return %c0_i32, %c0_i32_0 : i32, i32
  }
  func.func @transform_4(%arg0: i32) -> (i32, i32) {
    %c0_i32 = arith.constant 0 : i32
    %c0_i32_0 = arith.constant 0 : i32
    %c0_i32_1 = arith.constant 0 : i32
    return %c0_i32, %c0_i32_0 : i32, i32
  }
  func.func @transform_5(%arg0: i32) -> (i32, i32) {
    %c0_i32 = arith.constant 0 : i32
    %c0_i32_0 = arith.constant 0 : i32
    %c0_i32_1 = arith.constant 0 : i32
    return %c0_i32, %c0_i32_0 : i32, i32
  }
  func.func @transform_6(%arg0: i32) -> (i32, i32) {
    %c0_i32 = arith.constant 0 : i32
    %c0_i32_0 = arith.constant 0 : i32
    %c0_i32_1 = arith.constant 0 : i32
    return %c0_i32, %c0_i32_0 : i32, i32
  }
  func.func @transform_7(%arg0: i32) -> (i32, i32) {
    %c0_i32 = arith.constant 0 : i32
    %c0_i32_0 = arith.constant 0 : i32
    %c0_i32_1 = arith.constant 0 : i32
    return %c0_i32, %c0_i32_0 : i32, i32
  }
  func.func @transform_8(%arg0: i32) -> (i32, i32) {
    %c0_i32 = arith.constant 0 : i32
    %c0_i32_0 = arith.constant 0 : i32
    %c0_i32_1 = arith.constant 0 : i32
    return %c0_i32, %c0_i32_0 : i32, i32
  }
  func.func @transform_9(%arg0: i32) -> (i32, i32) {
    %c0_i32 = arith.constant 0 : i32
    %c0_i32_0 = arith.constant 0 : i32
    %c0_i32_1 = arith.constant 0 : i32
    return %c0_i32, %c0_i32_0 : i32, i32
  }
  func.func @transform_10(%arg0: i32) -> (i32, i32) {
    %c0_i32 = arith.constant 0 : i32
    %c0_i32_0 = arith.constant 0 : i32
    %c0_i32_1 = arith.constant 0 : i32
    return %c0_i32, %c0_i32_0 : i32, i32
  }
  func.func @transform_11(%arg0: i32) -> (i32, i32) {
    %c0_i32 = arith.constant 0 : i32
    %c0_i32_0 = arith.constant 0 : i32
    %c0_i32_1 = arith.constant 0 : i32
    return %c0_i32, %c0_i32_0 : i32, i32
  }
  func.func @transform_12(%arg0: i32) -> (i32, i32) {
    %c0_i32 = arith.constant 0 : i32
    %c0_i32_0 = arith.constant 0 : i32
    %c0_i32_1 = arith.constant 0 : i32
    return %c0_i32, %c0_i32_0 : i32, i32
  }
  func.func @transform_13(%arg0: i32) -> (i32, i32) {
    %c0_i32 = arith.constant 0 : i32
    %c0_i32_0 = arith.constant 0 : i32
    %c0_i32_1 = arith.constant 0 : i32
    return %c0_i32, %c0_i32_0 : i32, i32
  }
  func.func @transform_14(%arg0: i32) -> (i32, i32) {
    %c0_i32 = arith.constant 0 : i32
    %c0_i32_0 = arith.constant 0 : i32
    %c0_i32_1 = arith.constant 0 : i32
    return %c0_i32, %c0_i32_0 : i32, i32
  }
  func.func @transform_15(%arg0: i32) -> (i32, i32) {
    %c0_i32 = arith.constant 0 : i32
    %c0_i32_0 = arith.constant 0 : i32
    %c0_i32_1 = arith.constant 0 : i32
    return %c0_i32, %c0_i32_0 : i32, i32
  }
  func.func @transform_16(%arg0: i32) -> (i32, i32) {
    %c0_i32 = arith.constant 0 : i32
    %c0_i32_0 = arith.constant 0 : i32
    %c0_i32_1 = arith.constant 0 : i32
    return %c0_i32, %c0_i32_0 : i32, i32
  }
  func.func @transform_17(%arg0: i32) -> (i32, i32) {
    %c0_i32 = arith.constant 0 : i32
    %c0_i32_0 = arith.constant 0 : i32
    %c0_i32_1 = arith.constant 0 : i32
    return %c0_i32, %c0_i32_0 : i32, i32
  }
  func.func @transform_18(%arg0: i32) -> (i32, i32) {
    %c0_i32 = arith.constant 0 : i32
    %c0_i32_0 = arith.constant 0 : i32
    %c0_i32_1 = arith.constant 0 : i32
    return %c0_i32, %c0_i32_0 : i32, i32
  }
  func.func @transform_19(%arg0: i32) -> (i32, i32) {
    %c0_i32 = arith.constant 0 : i32
    %c0_i32_0 = arith.constant 0 : i32
    return %arg0, %c0_i32 : i32, i32
  }
  func.func @transform_20(%arg0: i32) -> (i32, i32) {
    %c0_i32 = arith.constant 0 : i32
    %c0_i32_0 = arith.constant 0 : i32
    return %arg0, %c0_i32 : i32, i32
  }
}

</mosaic_0001>

<bundles_post_ra>
// kernel: _forward_impl.1
= control target key start
LH: loop header
LB: loop body
LE: loop exit
PB: predicated region body
PF: predicated region fallthrough
CT: control target
= control target key end

     0   :  { %s4675_s0 = inlined_call_operand.vmem [shape: bf16[8,8,28], index: 0, kind: input, shape index: {}]   ;;  %s4676_s1 = inlined_call_operand.vmem [shape: f32[8,3], index: 1, kind: input, shape index: {}]   ;;  %s4677_s2 = inlined_call_operand.hbm [shape: bf16[28,256], index: 2, kind: input, shape index: {}]   ;;  %s4678_s3 = inlined_call_operand.vmem [shape: f32[1,256], index: 3, kind: input, shape index: {}]   ;;  %s4679_s4 = inlined_call_operand.vmem [shape: bf16[256,256], index: 4, kind: input, shape index: {}]   ;;  %s4680_s5 = inlined_call_operand.vmem [shape: f32[1,256], index: 5, kind: input, shape index: {}]   ;;  %s4681_s6 = inlined_call_operand.hbm [shape: bf16[256,256], index: 6, kind: input, shape index: {}]   ;;  %s4682_s7 = inlined_call_operand.vmem [shape: f32[1,256], index: 7, kind: input, shape index: {}]   ;;  %s4683_s8 = inlined_call_operand.hbm [shape: bf16[256,256], index: 8, kind: input, shape index: {}]   ;;  %s4684_s9 = inlined_call_operand.vmem [shape: f32[1,256], index: 9, kind: input, shape index: {}]   ;;  %s4685_s10 = inlined_call_operand.hbm [shape: bf16[256,256], index: 10, kind: input, shape index: {}]   ;;  %s4686_s11 = inlined_call_operand.hbm [shape: f32[1,256], index: 11, kind: input, shape index: {}]   ;;  %s4687_s12 = inlined_call_operand.hbm [shape: bf16[256,256], index: 12, kind: input, shape index: {}]   ;;  %s4688_s13 = inlined_call_operand.hbm [shape: f32[1,256], index: 13, kind: input, shape index: {}]   ;;  %s4689_s14 = inlined_call_operand.vmem [shape: bf16[256,32], index: 14, kind: input, shape index: {}]   ;;  %s4690_s15 = inlined_call_operand.hbm [shape: f32[1,32], index: 15, kind: input, shape index: {}]   ;;  %s4691_s16 = inlined_call_operand.hbm [shape: f32[3,1024], index: 16, kind: input, shape index: {}]   ;;  %s4692_s17 = inlined_call_operand.hbm [shape: bf16[32,1024], index: 17, kind: input, shape index: {}]   ;;  %s4693_s18 = inlined_call_operand.vmem [shape: f32[1,1024], index: 18, kind: input, shape index: {}]   ;;  %s4694_s19 = inlined_call_operand.vmem [shape: f32[8,512], index: 19, kind: output, shape index: {0}]   ;;  %s4695_s20 = inlined_call_operand.vmem [shape: f32[8,512], index: 20, kind: output, shape index: {1}]  }
   0x1   :  { %4700 = sst [smem:[#allocation24_spill]] %s4675_s0 }
   0x2   :  { %4701 = sst [smem:[#allocation25_spill]] %s4676_s1 }
   0x3   :  { %4702 = sst [smem:[#allocation26_spill]] %s4677_s2 }
   0x4   :  { %4703 = sst [smem:[#allocation27_spill]] %s4678_s3 }
   0x5   :  { %4704 = sst [smem:[#allocation28_spill]] %s4679_s4 }
   0x6   :  { %26 = vsyncpa [#allocation3], 0 }
   0x7   :  { %27 = vsyncpa [#allocation5], 0 }
   0x8   :  { %28 = vsyncpa [#allocation8], 0 }
   0x9   :  { %29 = vsyncpa [#allocation11], 0 }
   0xa   :  { %30 = vsyncpa [#allocation14], 0 }
   0xb   :  { %31 = vsyncpa [#allocation17], 0  ;;  %s3683_s1 = smov [#allocation4]   ;;  %s3684_s23 = smov [#allocation7]  }
   0xc   :  { %s59_s22 = sshll.u32 %s3683_s1, 4  ;;  %s87_s24 = sshll.u32 %s3684_s23, 4  ;;  %s60_s22 = int_to_ptr.vmem [resolvable:$true] %s59_s22  ;;  %s88_s24 = int_to_ptr.vmem [resolvable:$true] %s87_s24 }
   0xd   :  { %s3479_s2 = scalar_lea.vmem %s60_s22, 4096  ;;  %p3484_p1 = scmp.lt.s32.totalorder %s60_s22, %s60_s22 }
   0xe   :  { %p3480_p0 = scmp.ne.s32.totalorder %s60_s22, %s3479_s2  ;;  %p3485_p2 = scmp.lt.s32.totalorder %s3479_s2, %s3479_s2 }
  0x10   :  { %p3486_p3 = por %p3485_p2, %p3484_p1 }
  0x12   :  { %p3487_p4 = pnand %p3486_p3, %p3480_p0 }
  0x14   :  { %3490 = shalt.err (!%p3487_p4)
}
  0x15   :  { %s3685_s25 = smov 128   ;;  %s3686_s3 = smov 8  }
  0x16   :  { %65 = dma.hbm_to_vmem [thread:$0]  %s4681_s6, 4096, %s60_s22, [#allocation5], %s3685_s25, %s3685_s25, %s3686_s3  }
  0x17   :  { %s3499_s28 = scalar_lea.vmem %s88_s24, 4096  ;;  %p3504_p6 = scmp.lt.s32.totalorder %s88_s24, %s88_s24 }
  0x18   :  { %p3500_p5 = scmp.ne.s32.totalorder %s88_s24, %s3499_s28  ;;  %p3505_p7 = scmp.lt.s32.totalorder %s3499_s28, %s3499_s28 }
  0x1a   :  { %p3506_p8 = por %p3505_p7, %p3504_p6 }
  0x1c   :  { %p3507_p9 = pnand %p3506_p8, %p3500_p5 }
  0x1e   :  { %3510 = shalt.err (!%p3507_p9)
}
  0x1f   :  { %93 = dma.hbm_to_vmem [thread:$0]  %s4685_s10, 4096, %s88_s24, [#allocation8], %s3685_s25, %s3685_s25, %s3686_s3  }
  0x20   :  { %s3687_s30 = smov [#allocation10]   ;;  %s3688_s21 = smov [#allocation13]  }
  0x21   :  { %s109_s0 = sshll.u32 %s3687_s30, 4  ;;  %s134_s1 = sshll.u32 %s3688_s21, 4  ;;  %s110_s0 = int_to_ptr.vmem [resolvable:$true] %s109_s0  ;;  %s135_s1 = int_to_ptr.vmem [resolvable:$true] %s134_s1 }
  0x22   :  { %s3519_s6 = scalar_lea.vmem %s110_s0, 4096  ;;  %p3524_p11 = scmp.lt.s32.totalorder %s110_s0, %s110_s0 }
  0x23   :  { %p3520_p10 = scmp.ne.s32.totalorder %s110_s0, %s3519_s6  ;;  %p3525_p12 = scmp.lt.s32.totalorder %s3519_s6, %s3519_s6 }
  0x25   :  { %p3526_p13 = por %p3525_p12, %p3524_p11 }
  0x27   :  { %p3527_p0 = pnand %p3526_p13, %p3520_p10 }
  0x29   :  { %3530 = shalt.err (!%p3527_p0)
}
  0x2a   :  { %115 = dma.hbm_to_vmem [thread:$0]  %s4687_s12, 4096, %s110_s0, [#allocation11], %s3685_s25, %s3685_s25, %s3686_s3  }
  0x2b   :  { %s3539_s10 = scalar_lea.vmem %s135_s1, 16  ;;  %s3543_s24 = scalar_lea.vmem %s135_s1, 32 }
  0x2c   :  { %p3540_p1 = scmp.ne.s32.totalorder %s135_s1, %s3539_s10  ;;  %p3544_p2 = scmp.lt.s32.totalorder %s135_s1, %s135_s1 }
  0x2d   :  { %p3545_p3 = scmp.lt.s32.totalorder %s3543_s24, %s3539_s10 }
  0x2f   :  { %p3546_p4 = por %p3545_p3, %p3544_p2 }
  0x31   :  { %p3547_p5 = pnand %p3546_p4, %p3540_p1 }
  0x33   :  { %3550 = shalt.err (!%p3547_p5)
}
  0x34   :  { %137 = dma.hbm_to_vmem [thread:$0]  %s4690_s15, 16, %s135_s1, [#allocation14]  }
  0x35   :  { %s3689_s27 = smov [#allocation2]   ;;  %s3690_s4 = smov [#allocation6]  }
  0x36   :  { %s41_s28 = sshll.u32 %s3689_s27, 4  ;;  %s73_s29 = sshll.u32 %s3690_s4, 4  ;;  %s42_s28 = int_to_ptr.vmem [resolvable:$true] %s41_s28  ;;  %s74_s29 = int_to_ptr.vmem [resolvable:$true] %s73_s29 }
  0x37   :  { %s3559_s30 = scalar_lea.vmem %s42_s28, 512  ;;  %p3564_p7 = scmp.lt.s32.totalorder %s42_s28, %s42_s28 }
  0x38   :  { %p3560_p6 = scmp.ne.s32.totalorder %s42_s28, %s3559_s30  ;;  %p3565_p8 = scmp.lt.s32.totalorder %s3559_s30, %s3559_s30 }
  0x3a   :  { %p3566_p9 = por %p3565_p8, %p3564_p7 }
  0x3c   :  { %p3567_p10 = pnand %p3566_p9, %p3560_p6 }
  0x3e   :  { %3570 = shalt.err (!%p3567_p10)
}
  0x3f   :  { %s4705_s21 = sld [smem:[#allocation26_spill]]  ;;  %s3579_s15 = scalar_lea.vmem %s74_s29, 4096 }
  0x40   :  { %p3580_p11 = scmp.ne.s32.totalorder %s74_s29, %s3579_s15  ;;  %p3584_p12 = scmp.lt.s32.totalorder %s74_s29, %s74_s29 }
  0x41   :  { %p3585_p13 = scmp.lt.s32.totalorder %s3579_s15, %s3579_s15 }
  0x43   :  { %p3586_p0 = por %p3585_p13, %p3584_p12 }
  0x45   :  { %47 = dma.hbm_to_vmem [thread:$0]  %s4705_s21, 512, %s42_s28, [#allocation3], %s3685_s25, %s3685_s25, %s3686_s3  }
  0x46   :  { %p3587_p1 = pnand %p3586_p0, %p3580_p11 }
  0x48   :  { %3590 = shalt.err (!%p3587_p1)
}
  0x49   :  { %79 = dma.hbm_to_vmem [thread:$0]  %s4683_s8, 4096, %s74_s29, [#allocation5], %s3685_s25, %s3685_s25, %s3686_s3  }
  0x4a   :  { %s3691_s22 = smov [#allocation9]   ;;  %s3692_s10 = smov [#allocation12]  }
  0x4b   :  { %s100_s23 = sshll.u32 %s3691_s22, 4  ;;  %s122_s24 = sshll.u32 %s3692_s10, 4  ;;  %s101_s23 = int_to_ptr.vmem [resolvable:$true] %s100_s23  ;;  %s123_s24 = int_to_ptr.vmem [resolvable:$true] %s122_s24 }
  0x4c   :  { %s3599_s2 = scalar_lea.vmem %s101_s23, 32  ;;  %p3604_p3 = scmp.lt.s32.totalorder %s101_s23, %s101_s23 }
  0x4d   :  { %p3600_p2 = scmp.ne.s32.totalorder %s101_s23, %s3599_s2  ;;  %p3605_p4 = scmp.lt.s32.totalorder %s3599_s2, %s3599_s2 }
  0x4f   :  { %p3606_p5 = por %p3605_p4, %p3604_p3 }
  0x51   :  { %p3607_p6 = pnand %p3606_p5, %p3600_p2 }
  0x53   :  { %3610 = shalt.err (!%p3607_p6)
}
  0x54   :  { %103 = dma.hbm_to_vmem [thread:$0]  %s4686_s11, 32, %s101_s23, [#allocation8]  }
  0x55   :  { %s3619_s28 = scalar_lea.vmem %s123_s24, 32  ;;  %p3624_p8 = scmp.lt.s32.totalorder %s123_s24, %s123_s24 }
  0x56   :  { %p3620_p7 = scmp.ne.s32.totalorder %s123_s24, %s3619_s28  ;;  %p3625_p9 = scmp.lt.s32.totalorder %s3619_s28, %s3619_s28 }
  0x58   :  { %p3626_p10 = por %p3625_p9, %p3624_p8 }
  0x5a   :  { %p3627_p11 = pnand %p3626_p10, %p3620_p7 }
  0x5c   :  { %3630 = shalt.err (!%p3627_p11)
}
  0x5d   :  { %125 = dma.hbm_to_vmem [thread:$0]  %s4688_s13, 32, %s123_s24, [#allocation11]  }
  0x5e   :  { %s3693_s3 = smov [#allocation15]   ;;  %s3694_s29 = smov [#allocation16]  }
  0x5f   :  { %s144_s4 = sshll.u32 %s3693_s3, 4  ;;  %s153_s30 = sshll.u32 %s3694_s29, 4  ;;  %s145_s4 = int_to_ptr.vmem [resolvable:$true] %s144_s4  ;;  %s154_s30 = int_to_ptr.vmem [resolvable:$true] %s153_s30 }
  0x60   :  { %s3639_s12 = scalar_lea.vmem %s145_s4, 512  ;;  %p3644_p13 = scmp.lt.s32.totalorder %s145_s4, %s145_s4 }
  0x61   :  { %p3640_p12 = scmp.ne.s32.totalorder %s145_s4, %s3639_s12  ;;  %p3645_p0 = scmp.lt.s32.totalorder %s3639_s12, %s3639_s12 }
  0x63   :  { %p3646_p1 = por %p3645_p0, %p3644_p13 }
  0x65   :  { %p3647_p2 = pnand %p3646_p1, %p3640_p12 }
  0x67   :  { %3650 = shalt.err (!%p3647_p2)
}
  0x68   :  { %147 = dma.hbm_to_vmem [thread:$0]  %s4691_s16, 512, %s145_s4, [#allocation14]  }
  0x69   :  { %s3659_s21 = scalar_lea.vmem %s154_s30, 2048  ;;  %p3664_p4 = scmp.lt.s32.totalorder %s154_s30, %s154_s30 }
  0x6a   :  { %p3660_p3 = scmp.ne.s32.totalorder %s154_s30, %s3659_s21  ;;  %p3665_p5 = scmp.lt.s32.totalorder %s3659_s21, %s3659_s21 }
  0x6c   :  { %p3666_p6 = por %p3665_p5, %p3664_p4 }
  0x6e   :  { %p3667_p7 = pnand %p3666_p6, %p3660_p3 }
  0x70   :  { %3670 = shalt.err (!%p3667_p7)
}
  0x71   :  { %s3695_s13 = smov 512   ;;  %s3696_s15 = smov 32  }
  0x72   :  { %159 = dma.hbm_to_vmem [thread:$0]  %s4692_s17, 2048, %s154_s30, [#allocation17], %s3695_s13, %s3695_s13, %s3696_s15  }
  0x73   :  { %3671 = dma.done.wait [#allocation3], 512  }
  0x74   :  { %3672 = vsyncadd [#allocation3], 4294966784 }
  0x75   :  { %3673 = dma.done.wait [#allocation5], 8192  }
  0x76   :  { %3674 = vsyncadd [#allocation5], 4294959104 }
  0x77   :  { %3675 = dma.done.wait [#allocation8], 4128  }
  0x78   :  { %3676 = vsyncadd [#allocation8], 4294963168 }
  0x79   :  { %3677 = dma.done.wait [#allocation11], 4128  }
  0x7a   :  { %3678 = vsyncadd [#allocation11], 4294963168 }
  0x7b   :  { %3679 = dma.done.wait [#allocation14], 528  }
  0x7c   :  { %3680 = vsyncadd [#allocation14], 4294966768 }
  0x7d   :  { %3681 = dma.done.wait [#allocation17], 2048  }
  0x7e   :  { %3682 = vsyncadd [#allocation17], 4294965248  ;;  %v4698_v0 = vmov 0   ;;  %vm247_vm0 = vcmask 1045504   ;;  %v3212_v3 = vld [vmem:[#allocation2 + $0x4] ss:$8 sps:$4 sm:$0xff]   ;;  %v215_v53 = vlaneseq }
  0x7f   :  { %286 = vmatprep.mubr.bf16.mxu0 %v4698_v0  ;;  %335 = vmatprep.mubr.bf16.mxu1 %v4698_v0  ;;  %v3209_v1 = vld [vmem:[#allocation2 + $0x14] ss:$8 sps:$4 sm:$0x3f]   ;;  %v3211_v2 = vld [vmem:[#allocation2 + $0x10] ss:$8 sps:$4 sm:$0x3f]  }
  0x80   :  { %3205 = vset.pattern.permute.xlu0 %v4698_v0  ;;  %2953 = vmatprep.subr.msk.bf16.mxu0 %vm247_vm0, %v3209_v1  ;;  %v249_v4 = vsel %vm247_vm0, %v3211_v2, 0  ;;  %v3214_v5 = vld [vmem:[#allocation2] ss:$8 sps:$4 sm:$0xff]   ;;  %s4706_s22 = sld [smem:[#allocation24_spill]]  ;;  %vm243_vm1 = vcmask 228352   ;;  %v4126_v54 = vshrl.u32 %v215_v53, 7 }
  0x81   :  { %2955 = vmatprep.subr.msk.bf16.mxu1 %vm247_vm0, %v3209_v1  ;;  %267 = vmatpush1.bf16.msra.mxu0 %v249_v4  ;;  %s4707_s21 = sld [smem:[#allocation28_spill]]  ;;  %vm2506_vm2 = vcmask 261120  }
  0x82   :  { %316 = vmatpush1.bf16.msra.mxu1 %v249_v4  ;;  %268 = vmatprep.subr.bf16.mxu0 %v3212_v3  ;;  %v4129_v55 = vsub.s32 0, %v4126_v54  ;;  %s4708_s4 = sld [smem:[#allocation27_spill]]  ;;  %v4135_v57 = vsub.s32 1, %v4126_v54 }
  0x83   :  { %317 = vmatprep.subr.bf16.mxu1 %v3212_v3  ;;  %s4711_s16 = sld [smem:[#allocation25_spill]] }
  0x85   :  { %269 = vmatpush1.bf16.msra.mxu0 %v3214_v5 }
  0x86   :  { %v194_v6 = vld [vmem:[%s4706_s22] sm:$0xf]  ;;  %v2942_v7 = vld [vmem:[%s4706_s22 + $0x4] sm:$0xf]  ;;  %318 = vmatpush1.bf16.msra.mxu1 %v3214_v5  ;;  %2957 = vmatprep.subr.msk.bf16.mxu0 %vm247_vm0, %v3209_v1  ;;  %v2943_v9 = vld [vmem:[%s4706_s22 + $0x8] sm:$0xf] }
  0x87   :  { %v299_v8 = vadd.bf16 %v2942_v7, %v194_v6  ;;  %2959 = vmatprep.subr.msk.bf16.mxu1 %vm247_vm0, %v3209_v1  ;;  %v2944_v10 = vld [vmem:[%s4706_s22 + $0xc] sm:$0xf]  ;;  %v348_v11 = vadd.bf16 %v2943_v9, %v194_v6  ;;  %v2945_v13 = vld [vmem:[%s4706_s22 + $0x10] sm:$0xf]  ;;  %v2946_v14 = vld [vmem:[%s4706_s22 + $0x14] sm:$0xf] }
  0x88   :  { %2954 = vmatmul.mubr.msk.bf16.vlgmr.msra.gmra.mxu0 %vm243_vm1, %v194_v6  ;;  %v397_v12 = vadd.bf16 %v2944_v10, %v2942_v7  ;;  %v446_v15 = vadd.bf16 %v2945_v13, %v2942_v7  ;;  %v495_v16 = vadd.bf16 %v2946_v14, %v2943_v9  ;;  %v2947_v17 = vld [vmem:[%s4706_s22 + $0x18] sm:$0xf]  ;;  %v2948_v18 = vld [vmem:[%s4706_s22 + $0x1c] sm:$0xf]  ;;  %v3911_v22 = vld [vmem:[%s4707_s21 + $0x64] ss:$8 sps:$4 sm:$0xff]  }
  0x89   :  { %2956 = vmatmul.mubr.msk.bf16.vlgmr.msra.gmra.mxu1 %vm243_vm1, %v299_v8  ;;  %365 = vmatpush1.bf16.msra.mxu0 %v249_v4  ;;  %v3898_v19 = vld [vmem:[%s4707_s21 + $0x74] ss:$8 sps:$4 sm:$0xff]   ;;  %v3905_v20 = vld [vmem:[%s4707_s21 + $0x70] ss:$8 sps:$4 sm:$0xff]   ;;  %v544_v21 = vadd.bf16 %v2947_v17, %v2943_v9  ;;  %v593_v23 = vadd.bf16 %v2948_v18, %v2944_v10  ;;  %v3918_v24 = vld [vmem:[%s4707_s21 + $0x60] ss:$8 sps:$4 sm:$0xff]  }
  0x8a   :  { %414 = vmatpush1.bf16.msra.mxu1 %v249_v4  ;;  %366 = vmatprep.subr.bf16.mxu0 %v3212_v3  ;;  %v3924_v25 = vld [vmem:[%s4707_s21 + $0x54] ss:$8 sps:$4 sm:$0xff]   ;;  %v3934_v26 = vld [vmem:[%s4707_s21 + $0x50] ss:$8 sps:$4 sm:$0xff]   ;;  %v3939_v27 = vld [vmem:[%s4707_s21 + $0x44] ss:$8 sps:$4 sm:$0xff]  }
  0x8b   :  { %415 = vmatprep.subr.bf16.mxu1 %v3212_v3  ;;  %384 = vmatprep.mubr.bf16.mxu0 %v4698_v0  ;;  %v3948_v28 = vld [vmem:[%s4707_s21 + $0x40] ss:$8 sps:$4 sm:$0xff]   ;;  %v3953_v29 = vld [vmem:[%s4707_s21 + $0x34] ss:$8 sps:$4 sm:$0xff]   ;;  %v3962_v30 = vld [vmem:[%s4707_s21 + $0x30] ss:$8 sps:$4 sm:$0xff]  }
  0x8c   :  { %433 = vmatprep.mubr.bf16.mxu1 %v4698_v0  ;;  %v3967_v31 = vld [vmem:[%s4707_s21 + $0x24] ss:$8 sps:$4 sm:$0xff]   ;;  %v3976_v32 = vld [vmem:[%s4707_s21 + $0x20] ss:$8 sps:$4 sm:$0xff]   ;;  %v3981_v33 = vld [vmem:[%s4707_s21 + $0x14] ss:$8 sps:$4 sm:$0xff]  }
  0x8d   :  { %367 = vmatpush1.bf16.msra.mxu0 %v3214_v5  ;;  %v3990_v34 = vld [vmem:[%s4707_s21 + $0x10] ss:$8 sps:$4 sm:$0xff]   ;;  %v3995_v35 = vld [vmem:[%s4707_s21 + $0x4] ss:$8 sps:$4 sm:$0xff]   ;;  %v4004_v36 = vld [vmem:[%s4707_s21] ss:$8 sps:$4 sm:$0xff]  }
  0x8e   :  { %416 = vmatpush1.bf16.msra.mxu1 %v3214_v5  ;;  %2961 = vmatprep.subr.msk.bf16.mxu0 %vm247_vm0, %v3209_v1  ;;  %v4009_v37 = vld [vmem:[%s4707_s21 + $0xf4] ss:$8 sps:$4 sm:$0xff]   ;;  %v4018_v38 = vld [vmem:[%s4707_s21 + $0xf0] ss:$8 sps:$4 sm:$0xff]   ;;  %v4023_v39 = vld [vmem:[%s4707_s21 + $0xe4] ss:$8 sps:$4 sm:$0xff]  }
  0x8f   :  { %2963 = vmatprep.subr.msk.bf16.mxu1 %vm247_vm0, %v3209_v1  ;;  %v4032_v40 = vld [vmem:[%s4707_s21 + $0xe0] ss:$8 sps:$4 sm:$0xff]   ;;  %v4037_v41 = vld [vmem:[%s4707_s21 + $0xd4] ss:$8 sps:$4 sm:$0xff]   ;;  %v4046_v42 = vld [vmem:[%s4707_s21 + $0xd0] ss:$8 sps:$4 sm:$0xff]  }
  0x90   :  { %2958 = vmatmul.mubr.msk.bf16.vlgmr.msra.gmra.mxu0 %vm243_vm1, %v348_v11  ;;  %v4051_v43 = vld [vmem:[%s4707_s21 + $0xc4] ss:$8 sps:$4 sm:$0xff]   ;;  %v4060_v44 = vld [vmem:[%s4707_s21 + $0xc0] ss:$8 sps:$4 sm:$0xff]   ;;  %v4065_v45 = vld [vmem:[%s4707_s21 + $0xb4] ss:$8 sps:$4 sm:$0xff]  }
  0x91   :  { %2960 = vmatmul.mubr.msk.bf16.vlgmr.msra.gmra.mxu1 %vm243_vm1, %v397_v12  ;;  %463 = vmatpush1.bf16.msra.mxu0 %v249_v4  ;;  %v4075_v46 = vld [vmem:[%s4707_s21 + $0xb0] ss:$8 sps:$4 sm:$0xff]   ;;  %v4082_v47 = vld [vmem:[%s4707_s21 + $0xa4] ss:$8 sps:$4 sm:$0xff]   ;;  %v4089_v48 = vld [vmem:[%s4707_s21 + $0xa0] ss:$8 sps:$4 sm:$0xff]  }
  0x92   :  { %482 = vmatprep.mubr.bf16.mxu0 %v4698_v0  ;;  %464 = vmatprep.subr.bf16.mxu0 %v3212_v3  ;;  %v4096_v49 = vld [vmem:[%s4707_s21 + $0x94] ss:$8 sps:$4 sm:$0xff]   ;;  %v4103_v50 = vld [vmem:[%s4707_s21 + $0x90] ss:$8 sps:$4 sm:$0xff]   ;;  %v4110_v51 = vld [vmem:[%s4707_s21 + $0x84] ss:$8 sps:$4 sm:$0xff]  }
  0x93   :  { %512 = vmatpush1.bf16.msra.mxu1 %v249_v4  ;;  %531 = vmatprep.mubr.bf16.mxu1 %v4698_v0  ;;  %v4117_v52 = vld [vmem:[%s4707_s21 + $0x80] ss:$8 sps:$4 sm:$0xff]  }
  0x94   :  { %513 = vmatprep.subr.bf16.mxu1 %v3212_v3  ;;  %v213_v56 = vld [vmem:[%s4708_s4] sm:$0x3] }
  0x95   :  { %465 = vmatpush1.bf16.msra.mxu0 %v3214_v5  ;;  %v4138_v58 = vrot.slane %v213_v56, %v4129_v55  ;;  %v4141_v59 = vrot.slane %v213_v56, %v4135_v57 }
  0x96   :  { %2965 = vmatprep.subr.msk.bf16.mxu0 %vm247_vm0, %v3209_v1 }
  0x97   :  { %514 = vmatpush1.bf16.msra.mxu1 %v3214_v5 }
  0x98   :  { %2967 = vmatprep.subr.msk.bf16.mxu1 %vm247_vm0, %v3209_v1  ;;  %2962 = vmatmul.mubr.msk.bf16.vlgmr.msra.gmra.mxu0 %vm243_vm1, %v446_v15 }
  0x99   :  { %561 = vmatpush1.bf16.msra.mxu0 %v249_v4  ;;  %580 = vmatprep.mubr.bf16.mxu0 %v4698_v0 }
  0x9a   :  { %2964 = vmatmul.mubr.msk.bf16.vlgmr.msra.gmra.mxu1 %vm243_vm1, %v495_v16  ;;  %562 = vmatprep.subr.bf16.mxu0 %v3212_v3 }
  0x9b   :  { %610 = vmatpush1.bf16.msra.mxu1 %v249_v4  ;;  %629 = vmatprep.mubr.bf16.mxu1 %v4698_v0 }
  0x9c   :  { %611 = vmatprep.subr.bf16.mxu1 %v3212_v3 }
  0x9d   :  { %563 = vmatpush1.bf16.msra.mxu0 %v3214_v5 }
  0x9e   :  { %846 = vmatprep.subr.bf16.mxu0 %v3898_v19 }
  0x9f   :  { %612 = vmatpush1.bf16.msra.mxu1 %v3214_v5 }
  0xa0   :  { %893 = vmatprep.subr.bf16.mxu1 %v3898_v19  ;;  %2966 = vmatmul.mubr.msk.bf16.vlgmr.msra.gmra.mxu0 %vm243_vm1, %v544_v21 }
  0xa1   :  { %847 = vmatpush1.bf16.msra.mxu0 %v3905_v20 }
  0xa2   :  { %2968 = vmatmul.mubr.msk.bf16.vlgmr.msra.gmra.mxu1 %vm243_vm1, %v593_v23  ;;  %848 = vmatprep.subr.bf16.mxu0 %v3911_v22 }
  0xa3   :  { %894 = vmatpush1.bf16.msra.mxu1 %v3905_v20 }
  0xa4   :  { %895 = vmatprep.subr.bf16.mxu1 %v3911_v22 }
  0xa5   :  { %849 = vmatpush1.bf16.msra.mxu0 %v3918_v24 }
  0xa6   :  { %850 = vmatprep.subr.bf16.mxu0 %v3924_v25 }
  0xa7   :  { %896 = vmatpush1.bf16.msra.mxu1 %v3918_v24 }
  0xa8   :  { %897 = vmatprep.subr.bf16.mxu1 %v3924_v25 }
  0xa9   :  { %851 = vmatpush1.bf16.msra.mxu0 %v3934_v26 }
  0xaa   :  { %852 = vmatprep.subr.bf16.mxu0 %v3939_v27 }
  0xab   :  { %898 = vmatpush1.bf16.msra.mxu1 %v3934_v26 }
  0xac   :  { %899 = vmatprep.subr.bf16.mxu1 %v3939_v27 }
  0xad   :  { %853 = vmatpush1.bf16.msra.mxu0 %v3948_v28 }
  0xae   :  { %854 = vmatprep.subr.bf16.mxu0 %v3953_v29 }
  0xaf   :  { %900 = vmatpush1.bf16.msra.mxu1 %v3948_v28 }
  0xb0   :  { %901 = vmatprep.subr.bf16.mxu1 %v3953_v29 }
  0xb1   :  { %855 = vmatpush1.bf16.msra.mxu0 %v3962_v30 }
  0xb2   :  { %856 = vmatprep.subr.bf16.mxu0 %v3967_v31 }
  0xb3   :  { %902 = vmatpush1.bf16.msra.mxu1 %v3962_v30 }
  0xb4   :  { %903 = vmatprep.subr.bf16.mxu1 %v3967_v31 }
  0xb5   :  { %857 = vmatpush1.bf16.msra.mxu0 %v3976_v32 }
  0xb6   :  { %858 = vmatprep.subr.bf16.mxu0 %v3981_v33 }
  0xb7   :  { %904 = vmatpush1.bf16.msra.mxu1 %v3976_v32 }
  0xb8   :  { %905 = vmatprep.subr.bf16.mxu1 %v3981_v33 }
  0xb9   :  { %859 = vmatpush1.bf16.msra.mxu0 %v3990_v34 }
  0xba   :  { %860 = vmatprep.subr.bf16.mxu0 %v3995_v35 }
  0xbb   :  { %906 = vmatpush1.bf16.msra.mxu1 %v3990_v34 }
  0xbc   :  { %907 = vmatprep.subr.bf16.mxu1 %v3995_v35 }
  0xbd   :  { %861 = vmatpush1.bf16.msra.mxu0 %v4004_v36 }
  0xbe   :  { %862 = vmatprep.subr.bf16.mxu0 %v4009_v37 }
  0xbf   :  { %908 = vmatpush1.bf16.msra.mxu1 %v4004_v36 }
  0xc0   :  { %909 = vmatprep.subr.bf16.mxu1 %v4009_v37 }
  0xc1   :  { %863 = vmatpush2.bf16.msra.mxu0 %v4018_v38 }
  0xc2   :  { %864 = vmatprep.subr.bf16.mxu0 %v4023_v39 }
  0xc3   :  { %910 = vmatpush2.bf16.msra.mxu1 %v4018_v38 }
  0xc4   :  { %911 = vmatprep.subr.bf16.mxu1 %v4023_v39 }
  0xc5   :  { %865 = vmatpush2.bf16.msra.mxu0 %v4032_v40 }
  0xc6   :  { %866 = vmatprep.subr.bf16.mxu0 %v4037_v41 }
  0xc7   :  { %912 = vmatpush2.bf16.msra.mxu1 %v4032_v40 }
  0xc8   :  { %913 = vmatprep.subr.bf16.mxu1 %v4037_v41 }
  0xc9   :  { %867 = vmatpush2.bf16.msra.mxu0 %v4046_v42 }
  0xca   :  { %868 = vmatprep.subr.bf16.mxu0 %v4051_v43 }
  0xcb   :  { %914 = vmatpush2.bf16.msra.mxu1 %v4046_v42 }
  0xcc   :  { %915 = vmatprep.subr.bf16.mxu1 %v4051_v43 }
  0xcd   :  { %869 = vmatpush2.bf16.msra.mxu0 %v4060_v44 }
  0xce   :  { %870 = vmatprep.subr.bf16.mxu0 %v4065_v45 }
  0xcf   :  { %916 = vmatpush2.bf16.msra.mxu1 %v4060_v44 }
  0xd0   :  { %917 = vmatprep.subr.bf16.mxu1 %v4065_v45 }
  0xd1   :  { %871 = vmatpush2.bf16.msra.mxu0 %v4075_v46 }
  0xd2   :  { %872 = vmatprep.subr.bf16.mxu0 %v4082_v47 }
  0xd3   :  { %918 = vmatpush2.bf16.msra.mxu1 %v4075_v46 }
  0xd4   :  { %919 = vmatprep.subr.bf16.mxu1 %v4082_v47 }
  0xd5   :  { %873 = vmatpush2.bf16.msra.mxu0 %v4089_v48 }
  0xd6   :  { %874 = vmatprep.subr.bf16.mxu0 %v4096_v49 }
  0xd7   :  { %920 = vmatpush2.bf16.msra.mxu1 %v4089_v48 }
  0xd8   :  { %921 = vmatprep.subr.bf16.mxu1 %v4096_v49 }
  0xd9   :  { %875 = vmatpush2.bf16.msra.mxu0 %v4103_v50 }
  0xda   :  { %876 = vmatprep.subr.bf16.mxu0 %v4110_v51 }
  0xdb   :  { %922 = vmatpush2.bf16.msra.mxu1 %v4103_v50 }
  0xdc   :  { %923 = vmatprep.subr.bf16.mxu1 %v4110_v51 }
  0xdd   :  { %877 = vmatpush2.bf16.msra.mxu0 %v4117_v52 }
  0xde   :  { %940 = vmatprep.subr.bf16.mxu0 %v3898_v19 }
  0xdf   :  { %924 = vmatpush2.bf16.msra.mxu1 %v4117_v52 }
  0xe0   :  { %987 = vmatprep.subr.bf16.mxu1 %v3898_v19 }
 0x148   :  { %v288_v60 = vpop.f32.mrf.mxu0 }
 0x149   :  { %v337_v61 = vpop.f32.mrf.mxu1  ;;  %v289_v62 = vadd.f32 %v288_v60, %v4138_v58 }
 0x14a   :  { %v338_v63 = vadd.f32 %v337_v61, %v4138_v58  ;;  %v290_v1 = vpop.f32.mrf.mxu0 }
 0x14b   :  { %v339_v2 = vpop.f32.mrf.mxu1  ;;  %v295_v3 = vmax.f32 %v289_v62, 0.0  ;;  %v291_v5 = vadd.f32 %v290_v1, %v4141_v59 }
 0x14c   :  { %v344_v4 = vmax.f32 %v338_v63, 0.0  ;;  %v340_v6 = vadd.f32 %v339_v2, %v4141_v59  ;;  %v292_v7 = vpop.f32.mrf.mxu0 }
 0x14d   :  { %v341_v8 = vpop.f32.mrf.mxu1  ;;  %v296_v9 = vmax.f32 %v291_v5, 0.0  ;;  %v4147_v11 = vpack.c.bf16 %v295_v3, %v295_v3 }
 0x14e   :  { %v345_v10 = vmax.f32 %v340_v6, 0.0  ;;  %v4149_v12 = vpack.c.bf16 %v344_v4, %v344_v4  ;;  %v293_v13 = vpop.f32.mrf.mxu0 }
 0x14f   :  { %v342_v14 = vpop.f32.mrf.mxu1  ;;  %v298_v15 = vpack.c.bf16 %v296_v9, %v296_v9 }
 0x150   :  { %v4151_v16 = vpack.c.bf16 %v345_v10, %v345_v10  ;;  %v386_v17 = vpop.f32.mrf.mxu0  ;;  %v891_v53 = vadd.bf16 %v4149_v12, %v4147_v11 }
 0x151   :  { %v435_v18 = vpop.f32.mrf.mxu1  ;;  %878 = vmatprep.mubr.bf16.mxu0 %v298_v15  ;;  %v387_v6 = vadd.f32 %v386_v17, %v4138_v58 }
 0x152   :  { %v436_v21 = vadd.f32 %v435_v18, %v4138_v58  ;;  %v892_v23 = vadd.bf16 %v4151_v16, %v298_v15  ;;  %v388_v56 = vpop.f32.mrf.mxu0  ;;  %879 = vmatmul.mubr.bf16.vlgmr.msra.gmra.mxu0 %v4147_v11 }
 0x153   :  { %v437_v60 = vpop.f32.mrf.mxu1  ;;  %v389_v62 = vadd.f32 %v388_v56, %v4141_v59  ;;  %941 = vmatpush1.bf16.msra.mxu0 %v3905_v20 }
 0x154   :  { %v442_v61 = vmax.f32 %v436_v21, 0.0  ;;  %v438_v63 = vadd.f32 %v437_v60, %v4141_v59  ;;  %925 = vmatprep.mubr.bf16.mxu1 %v892_v23  ;;  %v390_v1 = vpop.f32.mrf.mxu0  ;;  %942 = vmatprep.subr.bf16.mxu0 %v3911_v22 }
 0x155   :  { %926 = vmatmul.mubr.bf16.vlgmr.msra.gmra.mxu1 %v891_v53  ;;  %v439_v2 = vpop.f32.mrf.mxu1  ;;  %v394_v4 = vmax.f32 %v389_v62, 0.0  ;;  %v393_v53 = vmax.f32 %v387_v6, 0.0 }
 0x156   :  { %v4162_v3 = vpack.c.bf16 %v442_v61, %v442_v61  ;;  %v443_v5 = vmax.f32 %v438_v63, 0.0  ;;  %988 = vmatpush1.bf16.msra.mxu1 %v3905_v20  ;;  %v391_v7 = vpop.f32.mrf.mxu0 }
 0x157   :  { %989 = vmatprep.subr.bf16.mxu1 %v3911_v22  ;;  %v440_v8 = vpop.f32.mrf.mxu1  ;;  %v4169_v10 = vpack.c.bf16 %v394_v4, %v394_v4  ;;  %943 = vmatpush1.bf16.msra.mxu0 %v3918_v24  ;;  %v4190_v6 = vpack.c.bf16 %v393_v53, %v393_v53 }
 0x158   :  { %v985_v9 = vadd.bf16 %v4162_v3, %v4149_v12  ;;  %v4171_v13 = vpack.c.bf16 %v443_v5, %v443_v5  ;;  %v484_v14 = vpop.f32.mrf.mxu0  ;;  %944 = vmatprep.subr.bf16.mxu0 %v3924_v25 }
 0x159   :  { %v485_v17 = vadd.f32 %v484_v14, %v4138_v58  ;;  %v939_v21 = vadd.bf16 %v4169_v10, %v298_v15 }
 0x15a   :  { %v986_v18 = vadd.bf16 %v4171_v13, %v4151_v16  ;;  %990 = vmatpush1.bf16.msra.mxu1 %v3918_v24  ;;  %v533_v23 = vpop.f32.mrf.mxu1  ;;  %v486_v56 = vpop.f32.mrf.mxu0 }
 0x15b   :  { %991 = vmatprep.subr.bf16.mxu1 %v3924_v25  ;;  %v534_v60 = vadd.f32 %v533_v23, %v4138_v58  ;;  %v491_v61 = vmax.f32 %v485_v17, 0.0  ;;  %v487_v62 = vadd.f32 %v486_v56, %v4141_v59  ;;  %945 = vmatpush1.bf16.msra.mxu0 %v3934_v26 }
 0x15c   :  { %972 = vmatprep.mubr.bf16.mxu0 %v939_v21  ;;  %v4184_v63 = vpop.f32.mrf.mxu1  ;;  %1019 = vmatprep.mubr.bf16.mxu1 %v986_v18  ;;  %v488_v15 = vpop.f32.mrf.mxu0 }
 0x15d   :  { %946 = vmatprep.subr.bf16.mxu0 %v3939_v27  ;;  %v540_v1 = vmax.f32 %v534_v60, 0.0  ;;  %v4187_v2 = vpack.c.bf16 %v491_v61, %v491_v61  ;;  %v492_v4 = vmax.f32 %v487_v62, 0.0 }
 0x15e   :  { %992 = vmatpush1.bf16.msra.mxu1 %v3934_v26  ;;  %v537_v5 = vpop.f32.mrf.mxu1  ;;  %v489_v8 = vpop.f32.mrf.mxu0 }
 0x15f   :  { %993 = vmatprep.subr.bf16.mxu1 %v3939_v27  ;;  %v4193_v7 = vpack.c.bf16 %v540_v1, %v540_v1  ;;  %v1032_v14 = vadd.bf16 %v4187_v2, %v4149_v12  ;;  %v4197_v18 = vpack.c.bf16 %v492_v4, %v492_v4  ;;  %947 = vmatpush1.bf16.msra.mxu0 %v3948_v28  ;;  %v3272_v12 = vld [vmem:[#allocation4 + $0x40] ss:$8 sps:$4 sm:$0xff]   ;;  %v3281_v2 = vld [vmem:[#allocation4 + $0x10] ss:$8 sps:$4 sm:$0xff]  }
 0x160   :  { %v538_v17 = vpop.f32.mrf.mxu1  ;;  %948 = vmatprep.subr.bf16.mxu0 %v3953_v29  ;;  %v582_v23 = vpop.f32.mrf.mxu0 }
 0x161   :  { %v1033_v53 = vadd.bf16 %v4197_v18, %v4151_v16  ;;  %v583_v56 = vadd.f32 %v582_v23, %v4138_v58  ;;  %v3277_v16 = vld [vmem:[#allocation4 + $0x34] ss:$8 sps:$4 sm:$0xff]   ;;  %v3287_v18 = vld [vmem:[#allocation4 + $0xf0] ss:$8 sps:$4 sm:$0xff]  }
 0x162   :  { %994 = vmatpush1.bf16.msra.mxu1 %v3948_v28  ;;  %v631_v60 = vpop.f32.mrf.mxu1  ;;  %v584_v61 = vpop.f32.mrf.mxu0 }
 0x163   :  { %995 = vmatprep.subr.bf16.mxu1 %v3953_v29  ;;  %v632_v62 = vadd.f32 %v631_v60, %v4138_v58  ;;  %949 = vmatpush1.bf16.msra.mxu0 %v3962_v30  ;;  %v589_v1 = vmax.f32 %v583_v56, 0.0  ;;  %v585_v15 = vadd.f32 %v584_v61, %v4141_v59 }
 0x164   :  { %v633_v4 = vpop.f32.mrf.mxu1  ;;  %950 = vmatprep.subr.bf16.mxu0 %v3967_v31  ;;  %v586_v17 = vpop.f32.mrf.mxu0 }
 0x165   :  { %v638_v5 = vmax.f32 %v632_v62, 0.0  ;;  %v634_v8 = vadd.f32 %v633_v4, %v4141_v59  ;;  %v4214_v23 = vpack.c.bf16 %v589_v1, %v589_v1  ;;  %v590_v0 = vmax.f32 %v585_v15, 0.0 }
 0x166   :  { %996 = vmatpush1.bf16.msra.mxu1 %v3962_v30  ;;  %v635_v21 = vpop.f32.mrf.mxu1  ;;  %v587_v60 = vpop.f32.mrf.mxu0 }
 0x167   :  { %997 = vmatprep.subr.bf16.mxu1 %v3967_v31  ;;  %v4217_v58 = vpack.c.bf16 %v638_v5, %v638_v5  ;;  %v639_v56 = vmax.f32 %v634_v8, 0.0  ;;  %951 = vmatpush1.bf16.msra.mxu0 %v3976_v32  ;;  %v1126_v61 = vadd.bf16 %v4214_v23, %v4190_v6  ;;  %v4222_v62 = vpack.c.bf16 %v590_v0, %v590_v0  ;;  %v3290_v23 = vld [vmem:[#allocation4 + $0xe0] ss:$8 sps:$4 sm:$0xff]   ;;  %v3298_v60 = vld [vmem:[#allocation4 + $0xc4] ss:$8 sps:$4 sm:$0xff]  }
 0x168   :  { %v636_v4 = vpop.f32.mrf.mxu1  ;;  %952 = vmatprep.subr.bf16.mxu0 %v3981_v33  ;;  %v536_v0 = vadd.f32 %v4184_v63, %v4141_v59  ;;  %v938_v59 = vadd.bf16 %v4190_v6, %v4147_v11  ;;  %v4709_v11 = vadd.bf16 %v4193_v7, %v4190_v6  ;;  %v3286_v6 = vld [vmem:[#allocation4 + $0x4] ss:$8 sps:$4 sm:$0xff]   ;;  %v3284_v7 = vld [vmem:[#allocation4] ss:$8 sps:$4 sm:$0xff]  }
 0x169   :  { %v1173_v1 = vadd.bf16 %v4217_v58, %v4162_v3  ;;  %v4227_v21 = vpack.c.bf16 %v639_v56, %v639_v56  ;;  %v1127_v15 = vadd.bf16 %v4222_v62, %v4169_v10  ;;  %v3275_v3 = vld [vmem:[#allocation4 + $0x30] ss:$8 sps:$4 sm:$0xff]   ;;  %v3295_v58 = vld [vmem:[#allocation4 + $0xd4] ss:$8 sps:$4 sm:$0xff]  }
 0x16a   :  { %998 = vmatpush1.bf16.msra.mxu1 %v3976_v32  ;;  %v541_v8 = vmax.f32 %v536_v0, 0.0  ;;  %v3293_v56 = vld [vmem:[#allocation4 + $0xd0] ss:$8 sps:$4 sm:$0xff]   ;;  %v3301_v62 = vld [vmem:[#allocation4 + $0xb4] ss:$8 sps:$4 sm:$0xff]  }
 0x16b   :  { %999 = vmatprep.subr.bf16.mxu1 %v3981_v33  ;;  %v1174_v5 = vadd.bf16 %v4227_v21, %v4171_v13  ;;  %953 = vmatpush1.bf16.msra.mxu0 %v3990_v34  ;;  %v3283_v13 = vld [vmem:[#allocation4 + $0x14] ss:$8 sps:$4 sm:$0xff]   ;;  %v3299_v4 = vld [vmem:[#allocation4 + $0xb0] ss:$8 sps:$4 sm:$0xff]   ;;  %v3304_v0 = vld [vmem:[#allocation4 + $0xa4] ss:$8 sps:$4 sm:$0xff]  }
 0x16c   :  { %954 = vmatprep.subr.bf16.mxu0 %v3995_v35  ;;  %v543_v17 = vpack.c.bf16 %v541_v8, %v541_v8 }
 0x16e   :  { %1000 = vmatpush1.bf16.msra.mxu1 %v3990_v34  ;;  %v1080_v63 = vadd.bf16 %v543_v17, %v4169_v10  ;;  %v3278_v10 = vld [vmem:[#allocation4 + $0x20] ss:$8 sps:$4 sm:$0xff]  }
 0x16f   :  { %1001 = vmatprep.subr.bf16.mxu1 %v3995_v35  ;;  %955 = vmatpush1.bf16.msra.mxu0 %v4004_v36 }
 0x170   :  { %956 = vmatprep.subr.bf16.mxu0 %v4009_v37 }
 0x172   :  { %1002 = vmatpush1.bf16.msra.mxu1 %v4004_v36 }
 0x173   :  { %1003 = vmatprep.subr.bf16.mxu1 %v4009_v37  ;;  %957 = vmatpush2.bf16.msra.mxu0 %v4018_v38 }
 0x174   :  { %958 = vmatprep.subr.bf16.mxu0 %v4023_v39 }
 0x176   :  { %1004 = vmatpush2.bf16.msra.mxu1 %v4018_v38 }
 0x177   :  { %1005 = vmatprep.subr.bf16.mxu1 %v4023_v39  ;;  %959 = vmatpush2.bf16.msra.mxu0 %v4032_v40 }
 0x178   :  { %960 = vmatprep.subr.bf16.mxu0 %v4037_v41 }
 0x17a   :  { %1006 = vmatpush2.bf16.msra.mxu1 %v4032_v40 }
 0x17b   :  { %1007 = vmatprep.subr.bf16.mxu1 %v4037_v41  ;;  %961 = vmatpush2.bf16.msra.mxu0 %v4046_v42 }
 0x17c   :  { %962 = vmatprep.subr.bf16.mxu0 %v4051_v43 }
 0x17e   :  { %1008 = vmatpush2.bf16.msra.mxu1 %v4046_v42 }
 0x17f   :  { %1009 = vmatprep.subr.bf16.mxu1 %v4051_v43  ;;  %963 = vmatpush2.bf16.msra.mxu0 %v4060_v44 }
 0x180   :  { %964 = vmatprep.subr.bf16.mxu0 %v4065_v45 }
 0x182   :  { %1010 = vmatpush2.bf16.msra.mxu1 %v4060_v44 }
 0x183   :  { %1011 = vmatprep.subr.bf16.mxu1 %v4065_v45  ;;  %965 = vmatpush2.bf16.msra.mxu0 %v4075_v46 }
 0x184   :  { %966 = vmatprep.subr.bf16.mxu0 %v4082_v47 }
 0x186   :  { %1012 = vmatpush2.bf16.msra.mxu1 %v4075_v46 }
 0x187   :  { %1013 = vmatprep.subr.bf16.mxu1 %v4082_v47  ;;  %967 = vmatpush2.bf16.msra.mxu0 %v4089_v48 }
 0x188   :  { %968 = vmatprep.subr.bf16.mxu0 %v4096_v49 }
 0x18a   :  { %1014 = vmatpush2.bf16.msra.mxu1 %v4089_v48 }
 0x18b   :  { %1015 = vmatprep.subr.bf16.mxu1 %v4096_v49  ;;  %969 = vmatpush2.bf16.msra.mxu0 %v4103_v50 }
 0x18c   :  { %970 = vmatprep.subr.bf16.mxu0 %v4110_v51 }
 0x18e   :  { %1016 = vmatpush2.bf16.msra.mxu1 %v4103_v50 }
 0x18f   :  { %1017 = vmatprep.subr.bf16.mxu1 %v4110_v51  ;;  %971 = vmatpush2.bf16.msra.mxu0 %v4117_v52 }
 0x190   :  { %1034 = vmatprep.subr.bf16.mxu0 %v3898_v19 }
 0x192   :  { %1018 = vmatpush2.bf16.msra.mxu1 %v4117_v52  ;;  %973 = vmatmul.mubr.bf16.vlgmr.msra.gmra.mxu0 %v938_v59 }
 0x193   :  { %1081 = vmatprep.subr.bf16.mxu1 %v3898_v19  ;;  %1035 = vmatpush1.bf16.msra.mxu0 %v3905_v20 }
 0x194   :  { %1066 = vmatprep.mubr.bf16.mxu0 %v1033_v53  ;;  %1036 = vmatprep.subr.bf16.mxu0 %v3911_v22  ;;  %v3292_v53 = vld [vmem:[#allocation4 + $0xe4] ss:$8 sps:$4 sm:$0xff]  }
 0x195   :  { %1020 = vmatmul.mubr.bf16.vlgmr.msra.gmra.mxu1 %v985_v9  ;;  %v3280_v9 = vld [vmem:[#allocation4 + $0x24] ss:$8 sps:$4 sm:$0xff]  }
 0x196   :  { %1082 = vmatpush1.bf16.msra.mxu1 %v3905_v20  ;;  %1113 = vmatprep.mubr.bf16.mxu1 %v1080_v63  ;;  %v3302_v63 = vld [vmem:[#allocation4 + $0xa0] ss:$8 sps:$4 sm:$0xff]  }
 0x197   :  { %1083 = vmatprep.subr.bf16.mxu1 %v3911_v22  ;;  %1037 = vmatpush1.bf16.msra.mxu0 %v3918_v24 }
 0x198   :  { %1038 = vmatprep.subr.bf16.mxu0 %v3924_v25 }
 0x19a   :  { %1084 = vmatpush1.bf16.msra.mxu1 %v3918_v24 }
 0x19b   :  { %1085 = vmatprep.subr.bf16.mxu1 %v3924_v25  ;;  %1039 = vmatpush1.bf16.msra.mxu0 %v3934_v26 }
 0x19c   :  { %1040 = vmatprep.subr.bf16.mxu0 %v3939_v27 }
 0x19e   :  { %1086 = vmatpush1.bf16.msra.mxu1 %v3934_v26 }
 0x19f   :  { %1087 = vmatprep.subr.bf16.mxu1 %v3939_v27  ;;  %1041 = vmatpush1.bf16.msra.mxu0 %v3948_v28 }
 0x1a0   :  { %1042 = vmatprep.subr.bf16.mxu0 %v3953_v29 }
 0x1a2   :  { %1088 = vmatpush1.bf16.msra.mxu1 %v3948_v28 }
 0x1a3   :  { %1089 = vmatprep.subr.bf16.mxu1 %v3953_v29  ;;  %1043 = vmatpush1.bf16.msra.mxu0 %v3962_v30 }
 0x1a4   :  { %1044 = vmatprep.subr.bf16.mxu0 %v3967_v31 }
 0x1a6   :  { %1090 = vmatpush1.bf16.msra.mxu1 %v3962_v30 }
 0x1a7   :  { %1091 = vmatprep.subr.bf16.mxu1 %v3967_v31  ;;  %1045 = vmatpush1.bf16.msra.mxu0 %v3976_v32 }
 0x1a8   :  { %1046 = vmatprep.subr.bf16.mxu0 %v3981_v33 }
 0x1aa   :  { %1092 = vmatpush1.bf16.msra.mxu1 %v3976_v32 }
 0x1ab   :  { %1093 = vmatprep.subr.bf16.mxu1 %v3981_v33  ;;  %1047 = vmatpush1.bf16.msra.mxu0 %v3990_v34 }
 0x1ac   :  { %1048 = vmatprep.subr.bf16.mxu0 %v3995_v35 }
 0x1ae   :  { %1094 = vmatpush1.bf16.msra.mxu1 %v3990_v34 }
 0x1af   :  { %1095 = vmatprep.subr.bf16.mxu1 %v3995_v35  ;;  %1049 = vmatpush1.bf16.msra.mxu0 %v4004_v36 }
 0x1b0   :  { %1050 = vmatprep.subr.bf16.mxu0 %v4009_v37 }
 0x1b2   :  { %1096 = vmatpush1.bf16.msra.mxu1 %v4004_v36 }
 0x1b3   :  { %1097 = vmatprep.subr.bf16.mxu1 %v4009_v37  ;;  %1051 = vmatpush2.bf16.msra.mxu0 %v4018_v38 }
 0x1b4   :  { %1052 = vmatprep.subr.bf16.mxu0 %v4023_v39 }
 0x1b6   :  { %1098 = vmatpush2.bf16.msra.mxu1 %v4018_v38 }
 0x1b7   :  { %1099 = vmatprep.subr.bf16.mxu1 %v4023_v39  ;;  %1053 = vmatpush2.bf16.msra.mxu0 %v4032_v40 }
 0x1b8   :  { %1054 = vmatprep.subr.bf16.mxu0 %v4037_v41 }
 0x1ba   :  { %1100 = vmatpush2.bf16.msra.mxu1 %v4032_v40 }
 0x1bb   :  { %1101 = vmatprep.subr.bf16.mxu1 %v4037_v41  ;;  %1055 = vmatpush2.bf16.msra.mxu0 %v4046_v42 }
 0x1bc   :  { %1056 = vmatprep.subr.bf16.mxu0 %v4051_v43 }
 0x1be   :  { %1102 = vmatpush2.bf16.msra.mxu1 %v4046_v42 }
 0x1bf   :  { %1103 = vmatprep.subr.bf16.mxu1 %v4051_v43  ;;  %1057 = vmatpush2.bf16.msra.mxu0 %v4060_v44 }
 0x1c0   :  { %1058 = vmatprep.subr.bf16.mxu0 %v4065_v45 }
 0x1c2   :  { %1104 = vmatpush2.bf16.msra.mxu1 %v4060_v44 }
 0x1c3   :  { %1105 = vmatprep.subr.bf16.mxu1 %v4065_v45  ;;  %1059 = vmatpush2.bf16.msra.mxu0 %v4075_v46 }
 0x1c4   :  { %1060 = vmatprep.subr.bf16.mxu0 %v4082_v47 }
 0x1c6   :  { %1106 = vmatpush2.bf16.msra.mxu1 %v4075_v46 }
 0x1c7   :  { %1107 = vmatprep.subr.bf16.mxu1 %v4082_v47  ;;  %1061 = vmatpush2.bf16.msra.mxu0 %v4089_v48 }
 0x1c8   :  { %1062 = vmatprep.subr.bf16.mxu0 %v4096_v49 }
 0x1ca   :  { %1108 = vmatpush2.bf16.msra.mxu1 %v4089_v48 }
 0x1cb   :  { %1109 = vmatprep.subr.bf16.mxu1 %v4096_v49  ;;  %1063 = vmatpush2.bf16.msra.mxu0 %v4103_v50 }
 0x1cc   :  { %1064 = vmatprep.subr.bf16.mxu0 %v4110_v51 }
 0x1ce   :  { %1110 = vmatpush2.bf16.msra.mxu1 %v4103_v50 }
 0x1cf   :  { %1111 = vmatprep.subr.bf16.mxu1 %v4110_v51  ;;  %1065 = vmatpush2.bf16.msra.mxu0 %v4117_v52 }
 0x1d0   :  { %1128 = vmatprep.subr.bf16.mxu0 %v3898_v19 }
 0x1d2   :  { %1112 = vmatpush2.bf16.msra.mxu1 %v4117_v52  ;;  %1067 = vmatmul.mubr.bf16.vlgmr.msra.gmra.mxu0 %v1032_v14  ;;  %v3289_v14 = vld [vmem:[#allocation4 + $0xf4] ss:$8 sps:$4 sm:$0xff]  }
 0x1d3   :  { %1175 = vmatprep.subr.bf16.mxu1 %v3898_v19  ;;  %1129 = vmatpush1.bf16.msra.mxu0 %v3905_v20  ;;  %v674_v19 = vld [vmem:[%s4680_s5] sm:$0x3] }
 0x1d4   :  { %1160 = vmatprep.mubr.bf16.mxu0 %v1127_v15  ;;  %1130 = vmatprep.subr.bf16.mxu0 %v3911_v22 }
 0x1d5   :  { %1114 = vmatmul.mubr.bf16.vlgmr.msra.gmra.mxu1 %v4709_v11 }
 0x1d6   :  { %1176 = vmatpush1.bf16.msra.mxu1 %v3905_v20  ;;  %1207 = vmatprep.mubr.bf16.mxu1 %v1174_v5  ;;  %v4427_v20 = vrot.slane %v674_v19, %v4129_v55 }
 0x1d7   :  { %1177 = vmatprep.subr.bf16.mxu1 %v3911_v22  ;;  %1131 = vmatpush1.bf16.msra.mxu0 %v3918_v24  ;;  %v4431_v22 = vrot.slane %v674_v19, %v4135_v57 }
 0x1d8   :  { %1132 = vmatprep.subr.bf16.mxu0 %v3924_v25 }
 0x1da   :  { %1178 = vmatpush1.bf16.msra.mxu1 %v3918_v24 }
 0x1db   :  { %1179 = vmatprep.subr.bf16.mxu1 %v3924_v25  ;;  %1133 = vmatpush1.bf16.msra.mxu0 %v3934_v26 }
 0x1dc   :  { %1134 = vmatprep.subr.bf16.mxu0 %v3939_v27 }
 0x1de   :  { %1180 = vmatpush1.bf16.msra.mxu1 %v3934_v26 }
 0x1df   :  { %1181 = vmatprep.subr.bf16.mxu1 %v3939_v27  ;;  %1135 = vmatpush1.bf16.msra.mxu0 %v3948_v28 }
 0x1e0   :  { %1136 = vmatprep.subr.bf16.mxu0 %v3953_v29 }
 0x1e2   :  { %1182 = vmatpush1.bf16.msra.mxu1 %v3948_v28 }
 0x1e3   :  { %1183 = vmatprep.subr.bf16.mxu1 %v3953_v29  ;;  %1137 = vmatpush1.bf16.msra.mxu0 %v3962_v30 }
 0x1e4   :  { %1138 = vmatprep.subr.bf16.mxu0 %v3967_v31 }
 0x1e6   :  { %1184 = vmatpush1.bf16.msra.mxu1 %v3962_v30 }
 0x1e7   :  { %1185 = vmatprep.subr.bf16.mxu1 %v3967_v31  ;;  %1139 = vmatpush1.bf16.msra.mxu0 %v3976_v32 }
 0x1e8   :  { %1140 = vmatprep.subr.bf16.mxu0 %v3981_v33 }
 0x1ea   :  { %1186 = vmatpush1.bf16.msra.mxu1 %v3976_v32 }
 0x1eb   :  { %1187 = vmatprep.subr.bf16.mxu1 %v3981_v33  ;;  %1141 = vmatpush1.bf16.msra.mxu0 %v3990_v34 }
 0x1ec   :  { %1142 = vmatprep.subr.bf16.mxu0 %v3995_v35 }
 0x1ee   :  { %1188 = vmatpush1.bf16.msra.mxu1 %v3990_v34 }
 0x1ef   :  { %1189 = vmatprep.subr.bf16.mxu1 %v3995_v35  ;;  %1143 = vmatpush1.bf16.msra.mxu0 %v4004_v36 }
 0x1f0   :  { %1144 = vmatprep.subr.bf16.mxu0 %v4009_v37 }
 0x1f2   :  { %1190 = vmatpush1.bf16.msra.mxu1 %v4004_v36 }
 0x1f3   :  { %1191 = vmatprep.subr.bf16.mxu1 %v4009_v37  ;;  %1145 = vmatpush2.bf16.msra.mxu0 %v4018_v38 }
 0x1f4   :  { %1146 = vmatprep.subr.bf16.mxu0 %v4023_v39 }
 0x1f6   :  { %1192 = vmatpush2.bf16.msra.mxu1 %v4018_v38 }
 0x1f7   :  { %1193 = vmatprep.subr.bf16.mxu1 %v4023_v39  ;;  %1147 = vmatpush2.bf16.msra.mxu0 %v4032_v40 }
 0x1f8   :  { %1148 = vmatprep.subr.bf16.mxu0 %v4037_v41 }
 0x1fa   :  { %1194 = vmatpush2.bf16.msra.mxu1 %v4032_v40 }
 0x1fb   :  { %1195 = vmatprep.subr.bf16.mxu1 %v4037_v41  ;;  %1149 = vmatpush2.bf16.msra.mxu0 %v4046_v42 }
 0x1fc   :  { %1150 = vmatprep.subr.bf16.mxu0 %v4051_v43 }
 0x1fe   :  { %1196 = vmatpush2.bf16.msra.mxu1 %v4046_v42 }
 0x1ff   :  { %1197 = vmatprep.subr.bf16.mxu1 %v4051_v43  ;;  %1151 = vmatpush2.bf16.msra.mxu0 %v4060_v44 }
 0x200   :  { %1152 = vmatprep.subr.bf16.mxu0 %v4065_v45 }
 0x202   :  { %1198 = vmatpush2.bf16.msra.mxu1 %v4060_v44 }
 0x203   :  { %1199 = vmatprep.subr.bf16.mxu1 %v4065_v45  ;;  %1153 = vmatpush2.bf16.msra.mxu0 %v4075_v46 }
 0x204   :  { %1154 = vmatprep.subr.bf16.mxu0 %v4082_v47 }
 0x206   :  { %1200 = vmatpush2.bf16.msra.mxu1 %v4075_v46  ;;  %v3263_v46 = vld [vmem:[#allocation4 + $0x70] ss:$8 sps:$4 sm:$0xff]  }
 0x207   :  { %1201 = vmatprep.subr.bf16.mxu1 %v4082_v47  ;;  %1155 = vmatpush2.bf16.msra.mxu0 %v4089_v48  ;;  %v3265_v47 = vld [vmem:[#allocation4 + $0x74] ss:$8 sps:$4 sm:$0xff]  }
 0x208   :  { %1156 = vmatprep.subr.bf16.mxu0 %v4096_v49 }
 0x20a   :  { %1202 = vmatpush2.bf16.msra.mxu1 %v4089_v48  ;;  %v3268_v48 = vld [vmem:[#allocation4 + $0x64] ss:$8 sps:$4 sm:$0xff]  }
 0x20b   :  { %1203 = vmatprep.subr.bf16.mxu1 %v4096_v49  ;;  %1157 = vmatpush2.bf16.msra.mxu0 %v4103_v50  ;;  %v3266_v49 = vld [vmem:[#allocation4 + $0x60] ss:$8 sps:$4 sm:$0xff]  }
 0x20c   :  { %1158 = vmatprep.subr.bf16.mxu0 %v4110_v51 }
 0x20e   :  { %1204 = vmatpush2.bf16.msra.mxu1 %v4103_v50  ;;  %v3271_v50 = vld [vmem:[#allocation4 + $0x54] ss:$8 sps:$4 sm:$0xff]  }
 0x20f   :  { %1205 = vmatprep.subr.bf16.mxu1 %v4110_v51  ;;  %1159 = vmatpush2.bf16.msra.mxu0 %v4117_v52  ;;  %v3269_v51 = vld [vmem:[#allocation4 + $0x50] ss:$8 sps:$4 sm:$0xff]  }
 0x210   :  { %1440 = vmatprep.subr.bf16.mxu0 %v3265_v47  ;;  %v3313_v47 = vld [vmem:[#allocation6 + $0x74] ss:$8 sps:$4 sm:$0xff]  }
 0x212   :  { %1206 = vmatpush2.bf16.msra.mxu1 %v4117_v52  ;;  %1161 = vmatmul.mubr.bf16.vlgmr.msra.gmra.mxu0 %v1126_v61  ;;  %v880_v24 = vpop.f32.mrf.mxu0  ;;  %v3274_v52 = vld [vmem:[#allocation4 + $0x44] ss:$8 sps:$4 sm:$0xff]   ;;  %v3296_v61 = vld [vmem:[#allocation4 + $0xc0] ss:$8 sps:$4 sm:$0xff]  }
 0x213   :  { %v881_v25 = vadd.f32 %v880_v24, %v4427_v20  ;;  %1441 = vmatpush1.bf16.msra.mxu0 %v3263_v46  ;;  %v3311_v46 = vld [vmem:[#allocation6 + $0x70] ss:$8 sps:$4 sm:$0xff]   ;;  %1689 = vmatprep.subr.bf16.mxu1 %v3313_v47 }
 0x214   :  { %v882_v26 = vpop.f32.mrf.mxu0  ;;  %1442 = vmatprep.subr.bf16.mxu0 %v3268_v48  ;;  %v3316_v48 = vld [vmem:[#allocation6 + $0x64] ss:$8 sps:$4 sm:$0xff]  }
 0x215   :  { %1208 = vmatmul.mubr.bf16.vlgmr.msra.gmra.mxu1 %v1173_v1  ;;  %v927_v27 = vpop.f32.mrf.mxu1  ;;  %v887_v28 = vmax.f32 %v881_v25, 0.0  ;;  %v883_v29 = vadd.f32 %v882_v26, %v4431_v22 }
 0x216   :  { %v928_v30 = vadd.f32 %v927_v27, %v4427_v20  ;;  %v884_v31 = vpop.f32.mrf.mxu0  ;;  %1690 = vmatpush1.bf16.msra.mxu1 %v3311_v46 }
 0x217   :  { %v929_v32 = vpop.f32.mrf.mxu1  ;;  %v888_v33 = vmax.f32 %v883_v29, 0.0  ;;  %v4443_v38 = vpack.c.bf16 %v887_v28, %v887_v28  ;;  %1443 = vmatpush1.bf16.msra.mxu0 %v3266_v49  ;;  %1691 = vmatprep.subr.bf16.mxu1 %v3316_v48  ;;  %v3322_v49 = vld [vmem:[#allocation6 + $0x44] ss:$8 sps:$4 sm:$0xff]  }
 0x218   :  { %v934_v34 = vmax.f32 %v928_v30, 0.0  ;;  %v930_v35 = vadd.f32 %v929_v32, %v4431_v22  ;;  %v885_v36 = vpop.f32.mrf.mxu0  ;;  %1444 = vmatprep.subr.bf16.mxu0 %v3271_v50  ;;  %v3307_v30 = vld [vmem:[#allocation4 + $0x94] ss:$8 sps:$4 sm:$0xff]   ;;  %v3320_v50 = vld [vmem:[#allocation6 + $0x40] ss:$8 sps:$4 sm:$0xff]  }
 0x219   :  { %v931_v37 = vpop.f32.mrf.mxu1  ;;  %v4447_v42 = vpack.c.bf16 %v888_v33, %v888_v33 }
 0x21a   :  { %v4445_v39 = vpack.c.bf16 %v934_v34, %v934_v34  ;;  %v935_v40 = vmax.f32 %v930_v35, 0.0  ;;  %v3305_v35 = vld [vmem:[#allocation4 + $0x90] ss:$8 sps:$4 sm:$0xff]  }
 0x21b   :  { %v932_v41 = vpop.f32.mrf.mxu1  ;;  %1445 = vmatpush1.bf16.msra.mxu0 %v3269_v51  ;;  %v3325_v51 = vld [vmem:[#allocation6 + $0x34] ss:$8 sps:$4 sm:$0xff]  }
 0x21c   :  { %v1220_v43 = vadd.bf16 %v4445_v39, %v4443_v38  ;;  %v4451_v44 = vpack.c.bf16 %v935_v40, %v935_v40  ;;  %1446 = vmatprep.subr.bf16.mxu0 %v3274_v52  ;;  %v3310_v38 = vld [vmem:[#allocation4 + $0x84] ss:$8 sps:$4 sm:$0xff]   ;;  %v3323_v52 = vld [vmem:[#allocation6 + $0x30] ss:$8 sps:$4 sm:$0xff]  }
 0x21e   :  { %v1221_v45 = vadd.bf16 %v4451_v44, %v4447_v42  ;;  %v3314_v42 = vld [vmem:[#allocation6 + $0x60] ss:$8 sps:$4 sm:$0xff]   ;;  %v3319_v44 = vld [vmem:[#allocation6 + $0x54] ss:$8 sps:$4 sm:$0xff]  }
 0x21f   :  { %1447 = vmatpush1.bf16.msra.mxu0 %v3272_v12  ;;  %1692 = vmatpush1.bf16.msra.mxu1 %v3314_v42  ;;  %v3328_v12 = vld [vmem:[#allocation6 + $0x24] ss:$8 sps:$4 sm:$0xff]  }
 0x220   :  { %1448 = vmatprep.subr.bf16.mxu0 %v3277_v16  ;;  %1693 = vmatprep.subr.bf16.mxu1 %v3319_v44  ;;  %v3326_v16 = vld [vmem:[#allocation6 + $0x20] ss:$8 sps:$4 sm:$0xff]  }
 0x223   :  { %1449 = vmatpush1.bf16.msra.mxu0 %v3275_v3  ;;  %v3331_v3 = vld [vmem:[#allocation6 + $0x14] ss:$8 sps:$4 sm:$0xff]  }
 0x224   :  { %1450 = vmatprep.subr.bf16.mxu0 %v3280_v9  ;;  %v3329_v9 = vld [vmem:[#allocation6 + $0x10] ss:$8 sps:$4 sm:$0xff]  }
 0x227   :  { %1451 = vmatpush1.bf16.msra.mxu0 %v3278_v10  ;;  %v3334_v10 = vld [vmem:[#allocation6 + $0x4] ss:$8 sps:$4 sm:$0xff]  }
 0x228   :  { %1452 = vmatprep.subr.bf16.mxu0 %v3283_v13  ;;  %v3332_v13 = vld [vmem:[#allocation6] ss:$8 sps:$4 sm:$0xff]  }
 0x22b   :  { %1453 = vmatpush1.bf16.msra.mxu0 %v3281_v2  ;;  %v3337_v2 = vld [vmem:[#allocation6 + $0xf4] ss:$8 sps:$4 sm:$0xff]  }
 0x22c   :  { %1454 = vmatprep.subr.bf16.mxu0 %v3286_v6  ;;  %v3335_v6 = vld [vmem:[#allocation6 + $0xf0] ss:$8 sps:$4 sm:$0xff]  }
 0x22f   :  { %1455 = vmatpush1.bf16.msra.mxu0 %v3284_v7  ;;  %v3340_v7 = vld [vmem:[#allocation6 + $0xe4] ss:$8 sps:$4 sm:$0xff]  }
 0x230   :  { %1456 = vmatprep.subr.bf16.mxu0 %v3289_v14  ;;  %v3338_v14 = vld [vmem:[#allocation6 + $0xe0] ss:$8 sps:$4 sm:$0xff]  }
 0x233   :  { %1457 = vmatpush2.bf16.msra.mxu0 %v3287_v18  ;;  %v3343_v18 = vld [vmem:[#allocation6 + $0xd4] ss:$8 sps:$4 sm:$0xff]  }
 0x234   :  { %1458 = vmatprep.subr.bf16.mxu0 %v3292_v53  ;;  %v3341_v53 = vld [vmem:[#allocation6 + $0xd0] ss:$8 sps:$4 sm:$0xff]  }
 0x237   :  { %1459 = vmatpush2.bf16.msra.mxu0 %v3290_v23  ;;  %v3346_v23 = vld [vmem:[#allocation6 + $0xc4] ss:$8 sps:$4 sm:$0xff]  }
 0x238   :  { %1460 = vmatprep.subr.bf16.mxu0 %v3295_v58  ;;  %v3344_v58 = vld [vmem:[#allocation6 + $0xc0] ss:$8 sps:$4 sm:$0xff]  }
 0x23b   :  { %1461 = vmatpush2.bf16.msra.mxu0 %v3293_v56  ;;  %v3349_v56 = vld [vmem:[#allocation6 + $0xb4] ss:$8 sps:$4 sm:$0xff]  }
 0x23c   :  { %1462 = vmatprep.subr.bf16.mxu0 %v3298_v60  ;;  %v3347_v60 = vld [vmem:[#allocation6 + $0xb0] ss:$8 sps:$4 sm:$0xff]  }
 0x23f   :  { %1463 = vmatpush2.bf16.msra.mxu0 %v3296_v61 }
 0x240   :  { %1464 = vmatprep.subr.bf16.mxu0 %v3301_v62  ;;  %v3352_v62 = vld [vmem:[#allocation6 + $0xa4] ss:$8 sps:$4 sm:$0xff]  }
 0x243   :  { %1465 = vmatpush2.bf16.msra.mxu0 %v3299_v4 }
 0x244   :  { %1466 = vmatprep.subr.bf16.mxu0 %v3304_v0 }
 0x247   :  { %1467 = vmatpush2.bf16.msra.mxu0 %v3302_v63 }
 0x248   :  { %1468 = vmatprep.subr.bf16.mxu0 %v3307_v30 }
 0x24b   :  { %1469 = vmatpush2.bf16.msra.mxu0 %v3305_v35 }
 0x24c   :  { %1470 = vmatprep.subr.bf16.mxu0 %v3310_v38 }
 0x252   :  { %v974_v1 = vpop.f32.mrf.mxu0 }
 0x253   :  { %v975_v21 = vadd.f32 %v974_v1, %v4427_v20 }
 0x254   :  { %v976_v15 = vpop.f32.mrf.mxu0 }
 0x255   :  { %v1021_v5 = vpop.f32.mrf.mxu1  ;;  %v981_v8 = vmax.f32 %v975_v21, 0.0  ;;  %v977_v17 = vadd.f32 %v976_v15, %v4431_v22  ;;  %v3350_v21 = vld [vmem:[#allocation6 + $0xa0] ss:$8 sps:$4 sm:$0xff]  }
 0x256   :  { %v1022_v59 = vadd.f32 %v1021_v5, %v4427_v20  ;;  %v978_v11 = vpop.f32.mrf.mxu0 }
 0x257   :  { %v1023_v19 = vpop.f32.mrf.mxu1  ;;  %v983_v24 = vpack.c.bf16 %v981_v8, %v981_v8  ;;  %v982_v25 = vmax.f32 %v977_v17, 0.0 }
 0x258   :  { %v1028_v26 = vmax.f32 %v1022_v59, 0.0  ;;  %v1024_v27 = vadd.f32 %v1023_v19, %v4431_v22  ;;  %v979_v28 = vpop.f32.mrf.mxu0 }
 0x259   :  { %v1025_v29 = vpop.f32.mrf.mxu1  ;;  %v4462_v31 = vadd.bf16 %v1220_v43, %v983_v24  ;;  %v984_v32 = vpack.c.bf16 %v982_v25, %v982_v25  ;;  %v3308_v43 = vld [vmem:[#allocation4 + $0x80] ss:$8 sps:$4 sm:$0xff]  }
 0x25a   :  { %v4464_v33 = vpack.c.bf16 %v1028_v26, %v1028_v26  ;;  %v1029_v34 = vmax.f32 %v1024_v27, 0.0  ;;  %1471 = vmatpush2.bf16.msra.mxu0 %v3308_v43 }
 0x25b   :  { %v1026_v36 = vpop.f32.mrf.mxu1  ;;  %v4469_v37 = vadd.bf16 %v1221_v45, %v984_v32  ;;  %v3317_v45 = vld [vmem:[#allocation6 + $0x50] ss:$8 sps:$4 sm:$0xff]  }
 0x25c   :  { %v1224_v40 = vadd.bf16 %v4462_v31, %v4464_v33  ;;  %v4473_v41 = vpack.c.bf16 %v1029_v34, %v1029_v34  ;;  %1694 = vmatpush1.bf16.msra.mxu1 %v3317_v45 }
 0x25d   :  { %1695 = vmatprep.subr.bf16.mxu1 %v3322_v49 }
 0x25e   :  { %v1225_v39 = vadd.bf16 %v4469_v37, %v4473_v41 }
 0x260   :  { %1696 = vmatpush1.bf16.msra.mxu1 %v3320_v50 }
 0x261   :  { %1697 = vmatprep.subr.bf16.mxu1 %v3325_v51 }
 0x264   :  { %1698 = vmatpush1.bf16.msra.mxu1 %v3323_v52 }
 0x265   :  { %1699 = vmatprep.subr.bf16.mxu1 %v3328_v12 }
 0x268   :  { %1700 = vmatpush1.bf16.msra.mxu1 %v3326_v16 }
 0x269   :  { %1701 = vmatprep.subr.bf16.mxu1 %v3331_v3 }
 0x26c   :  { %1702 = vmatpush1.bf16.msra.mxu1 %v3329_v9 }
 0x26d   :  { %1703 = vmatprep.subr.bf16.mxu1 %v3334_v10 }
 0x270   :  { %1704 = vmatpush1.bf16.msra.mxu1 %v3332_v13 }
 0x271   :  { %1705 = vmatprep.subr.bf16.mxu1 %v3337_v2 }
 0x274   :  { %1706 = vmatpush2.bf16.msra.mxu1 %v3335_v6 }
 0x275   :  { %1707 = vmatprep.subr.bf16.mxu1 %v3340_v7  ;;  %v3355_v7 = vld [vmem:[#allocation6 + $0x94] ss:$8 sps:$4 sm:$0xff]  }
 0x278   :  { %1708 = vmatpush2.bf16.msra.mxu1 %v3338_v14  ;;  %v3353_v14 = vld [vmem:[#allocation6 + $0x90] ss:$8 sps:$4 sm:$0xff]  }
 0x279   :  { %1709 = vmatprep.subr.bf16.mxu1 %v3343_v18  ;;  %v3356_v18 = vld [vmem:[#allocation6 + $0x80] ss:$8 sps:$4 sm:$0xff]  }
 0x27c   :  { %1710 = vmatpush2.bf16.msra.mxu1 %v3341_v53  ;;  %v3359_v53 = vld [vmem:[#allocation7 + $0x70] ss:$8 sps:$4 sm:$0xff]  }
 0x27d   :  { %1711 = vmatprep.subr.bf16.mxu1 %v3346_v23  ;;  %v3361_v23 = vld [vmem:[#allocation7 + $0x74] ss:$8 sps:$4 sm:$0xff]  }
 0x27e   :  { %1938 = vmatprep.subr.bf16.mxu0 %v3361_v23  ;;  %v3431_v23 = vld [vmem:[#allocation10 + $0xf0] ss:$8 sps:$4 sm:$0xff]  }
 0x280   :  { %1712 = vmatpush2.bf16.msra.mxu1 %v3344_v58  ;;  %v3364_v58 = vld [vmem:[#allocation7 + $0x64] ss:$8 sps:$4 sm:$0xff]  }
 0x281   :  { %1713 = vmatprep.subr.bf16.mxu1 %v3349_v56  ;;  %v3362_v56 = vld [vmem:[#allocation7 + $0x60] ss:$8 sps:$4 sm:$0xff]  }
 0x284   :  { %1714 = vmatpush2.bf16.msra.mxu1 %v3347_v60  ;;  %v3367_v60 = vld [vmem:[#allocation7 + $0x54] ss:$8 sps:$4 sm:$0xff]  }
 0x285   :  { %1715 = vmatprep.subr.bf16.mxu1 %v3352_v62  ;;  %v3370_v62 = vld [vmem:[#allocation7 + $0x44] ss:$8 sps:$4 sm:$0xff]  }
 0x288   :  { %1716 = vmatpush2.bf16.msra.mxu1 %v3350_v21  ;;  %v3371_v21 = vld [vmem:[#allocation7 + $0x30] ss:$8 sps:$4 sm:$0xff]  }
 0x289   :  { %1717 = vmatprep.subr.bf16.mxu1 %v3355_v7  ;;  %v3427_v7 = vld [vmem:[#allocation10 + $0x14] ss:$8 sps:$4 sm:$0xff]  }
 0x28c   :  { %1718 = vmatpush2.bf16.msra.mxu1 %v3353_v14  ;;  %v3425_v14 = vld [vmem:[#allocation10 + $0x10] ss:$8 sps:$4 sm:$0xff]  }
 0x292   :  { %v1068_v61 = vpop.f32.mrf.mxu0 }
 0x293   :  { %v1069_v59 = vadd.f32 %v1068_v61, %v4427_v20  ;;  %v3365_v61 = vld [vmem:[#allocation7 + $0x50] ss:$8 sps:$4 sm:$0xff]  }
 0x294   :  { %v1070_v4 = vpop.f32.mrf.mxu0 }
 0x295   :  { %v1115_v1 = vpop.f32.mrf.mxu1  ;;  %v1071_v63 = vadd.f32 %v1070_v4, %v4431_v22  ;;  %v1075_v11 = vmax.f32 %v1069_v59, 0.0  ;;  %v3368_v4 = vld [vmem:[#allocation7 + $0x40] ss:$8 sps:$4 sm:$0xff]  }
 0x296   :  { %v1072_v15 = vpop.f32.mrf.mxu0  ;;  %v1116_v19 = vadd.f32 %v1115_v1, %v4427_v20  ;;  %v3373_v1 = vld [vmem:[#allocation7 + $0x34] ss:$8 sps:$4 sm:$0xff]   ;;  %v3380_v59 = vld [vmem:[#allocation7] ss:$8 sps:$4 sm:$0xff]  }
 0x297   :  { %v1117_v5 = vpop.f32.mrf.mxu1  ;;  %v1076_v24 = vmax.f32 %v1071_v63, 0.0  ;;  %v1077_v26 = vpack.c.bf16 %v1075_v11, %v1075_v11  ;;  %v3376_v15 = vld [vmem:[#allocation7 + $0x24] ss:$8 sps:$4 sm:$0xff]   ;;  %v3385_v63 = vld [vmem:[#allocation7 + $0xf4] ss:$8 sps:$4 sm:$0xff]  }
 0x298   :  { %v1073_v0 = vpop.f32.mrf.mxu0  ;;  %v1118_v25 = vadd.f32 %v1117_v5, %v4431_v22  ;;  %v1122_v27 = vmax.f32 %v1116_v19, 0.0  ;;  %v3374_v5 = vld [vmem:[#allocation7 + $0x20] ss:$8 sps:$4 sm:$0xff]   ;;  %v3383_v11 = vld [vmem:[#allocation7 + $0xf0] ss:$8 sps:$4 sm:$0xff]  }
 0x299   :  { %v1119_v8 = vpop.f32.mrf.mxu1  ;;  %v1078_v28 = vpack.c.bf16 %v1076_v24, %v1076_v24  ;;  %v1226_v30 = vadd.bf16 %v1224_v40, %v1077_v26  ;;  %v3379_v0 = vld [vmem:[#allocation7 + $0x14] ss:$8 sps:$4 sm:$0xff]   ;;  %v3388_v19 = vld [vmem:[#allocation7 + $0xe4] ss:$8 sps:$4 sm:$0xff]   ;;  %v3386_v24 = vld [vmem:[#allocation7 + $0xe0] ss:$8 sps:$4 sm:$0xff]  }
 0x29a   :  { %v1123_v29 = vmax.f32 %v1118_v25, 0.0  ;;  %v1124_v32 = vpack.c.bf16 %v1122_v27, %v1122_v27  ;;  %v3377_v8 = vld [vmem:[#allocation7 + $0x10] ss:$8 sps:$4 sm:$0xff]   ;;  %v3391_v25 = vld [vmem:[#allocation7 + $0xd4] ss:$8 sps:$4 sm:$0xff]  }
 0x29b   :  { %v1120_v17 = vpop.f32.mrf.mxu1  ;;  %v1227_v36 = vadd.bf16 %v1225_v39, %v1078_v28  ;;  %v3389_v26 = vld [vmem:[#allocation7 + $0xd0] ss:$8 sps:$4 sm:$0xff]   ;;  %v3394_v27 = vld [vmem:[#allocation7 + $0xc4] ss:$8 sps:$4 sm:$0xff]   ;;  %v3392_v28 = vld [vmem:[#allocation7 + $0xc0] ss:$8 sps:$4 sm:$0xff]  }
 0x29c   :  { %v1125_v38 = vpack.c.bf16 %v1123_v29, %v1123_v29  ;;  %v1228_v44 = vadd.bf16 %v1226_v30, %v1124_v32  ;;  %v3382_v17 = vld [vmem:[#allocation7 + $0x4] ss:$8 sps:$4 sm:$0xff]   ;;  %v3397_v29 = vld [vmem:[#allocation7 + $0xb4] ss:$8 sps:$4 sm:$0xff]   ;;  %v3395_v30 = vld [vmem:[#allocation7 + $0xb0] ss:$8 sps:$4 sm:$0xff]  }
 0x29d   :  { %v3400_v32 = vld [vmem:[#allocation7 + $0xa4] ss:$8 sps:$4 sm:$0xff]  }
 0x29e   :  { %v1229_v51 = vadd.bf16 %v1227_v36, %v1125_v38 }
 0x2d2   :  { %v1162_v34 = vpop.f32.mrf.mxu0 }
 0x2d3   :  { %v1163_v35 = vadd.f32 %v1162_v34, %v4427_v20  ;;  %v3398_v34 = vld [vmem:[#allocation7 + $0xa0] ss:$8 sps:$4 sm:$0xff]  }
 0x2d4   :  { %v1164_v43 = vpop.f32.mrf.mxu0 }
 0x2d5   :  { %v1209_v46 = vpop.f32.mrf.mxu1  ;;  %v1169_v47 = vmax.f32 %v1163_v35, 0.0  ;;  %v1165_v48 = vadd.f32 %v1164_v43, %v4431_v22  ;;  %v1268_v35 = vld [vmem:[%s4682_s7] sm:$0x3] }
 0x2d6   :  { %v1210_v42 = vadd.f32 %v1209_v46, %v4427_v20  ;;  %v1166_v45 = vpop.f32.mrf.mxu0  ;;  %v1273_v36 = vrot.slane %v1268_v35, %v4129_v55  ;;  %v1277_v38 = vrot.slane %v1268_v35, %v4135_v57  ;;  %v3452_v35 = vld [vmem:[#allocation10 + $0x80] ss:$8 sps:$4 sm:$0xff]  }
 0x2d7   :  { %v1211_v31 = vpop.f32.mrf.mxu1  ;;  %v1171_v33 = vpack.c.bf16 %v1169_v47, %v1169_v47  ;;  %v1170_v40 = vmax.f32 %v1165_v48, 0.0 }
 0x2d8   :  { %v1216_v49 = vmax.f32 %v1210_v42, 0.0  ;;  %v1212_v50 = vadd.f32 %v1211_v31, %v4431_v22  ;;  %v1167_v52 = vpop.f32.mrf.mxu0  ;;  %v3358_v22 = vld [vmem:[#allocation6 + $0x84] ss:$8 sps:$4 sm:$0xff]  }
 0x2d9   :  { %v1213_v37 = vpop.f32.mrf.mxu1  ;;  %v1230_v41 = vadd.bf16 %v1228_v44, %v1171_v33  ;;  %v1172_v39 = vpack.c.bf16 %v1170_v40, %v1170_v40  ;;  %1719 = vmatprep.subr.bf16.mxu1 %v3358_v22  ;;  %v3404_v52 = vld [vmem:[#allocation7 + $0x80] ss:$8 sps:$4 sm:$0xff]  }
 0x2da   :  { %v1218_v12 = vpack.c.bf16 %v1216_v49, %v1216_v49  ;;  %v1217_v16 = vmax.f32 %v1212_v50, 0.0  ;;  %1720 = vmatpush2.bf16.msra.mxu1 %v3356_v18  ;;  %v3403_v49 = vld [vmem:[#allocation7 + $0x94] ss:$8 sps:$4 sm:$0xff]   ;;  %v3401_v50 = vld [vmem:[#allocation7 + $0x90] ss:$8 sps:$4 sm:$0xff]  }
 0x2db   :  { %v1214_v3 = vpop.f32.mrf.mxu1  ;;  %v1231_v9 = vadd.bf16 %v1229_v51, %v1172_v39  ;;  %v3406_v51 = vld [vmem:[#allocation7 + $0x84] ss:$8 sps:$4 sm:$0xff]   ;;  %v3407_v37 = vld [vmem:[#allocation10 + $0x70] ss:$8 sps:$4 sm:$0xff]  }
 0x2dc   :  { %v1219_v10 = vpack.c.bf16 %v1217_v16, %v1217_v16  ;;  %v1232_v13 = vadd.bf16 %v1230_v41, %v1218_v12  ;;  %v3409_v41 = vld [vmem:[#allocation10 + $0x74] ss:$8 sps:$4 sm:$0xff]   ;;  %v3412_v39 = vld [vmem:[#allocation10 + $0x64] ss:$8 sps:$4 sm:$0xff]   ;;  %v3410_v12 = vld [vmem:[#allocation10 + $0x60] ss:$8 sps:$4 sm:$0xff]  }
 0x2dd   :  { %2187 = vmatprep.subr.bf16.mxu1 %v3409_v41  ;;  %v3415_v16 = vld [vmem:[#allocation10 + $0x54] ss:$8 sps:$4 sm:$0xff]   ;;  %v3413_v3 = vld [vmem:[#allocation10 + $0x50] ss:$8 sps:$4 sm:$0xff]   ;;  %v3430_v22 = vld [vmem:[#allocation10 + $0x4] ss:$8 sps:$4 sm:$0xff]  }
 0x2de   :  { %v1233_v20 = vadd.bf16 %v1231_v9, %v1219_v10  ;;  %v1234_v6 = vmul.bf16 1040203264, %v1232_v13  ;;  %v3418_v9 = vld [vmem:[#allocation10 + $0x44] ss:$8 sps:$4 sm:$0xff]   ;;  %v3416_v10 = vld [vmem:[#allocation10 + $0x40] ss:$8 sps:$4 sm:$0xff]  }
 0x2df   :  { %v3421_v13 = vld [vmem:[#allocation10 + $0x34] ss:$8 sps:$4 sm:$0xff]   ;;  %v3428_v18 = vld [vmem:[#allocation10] ss:$8 sps:$4 sm:$0xff]  }
 0x2e0   :  { %v1235_v2 = vmul.bf16 1040203264, %v1233_v20  ;;  %v3419_v20 = vld [vmem:[#allocation10 + $0x30] ss:$8 sps:$4 sm:$0xff]  }
 0x2e2   :  { %1472 = vmatprep.mubr.bf16.mxu0 %v1235_v2  ;;  %v3424_v2 = vld [vmem:[#allocation10 + $0x24] ss:$8 sps:$4 sm:$0xff]  }
 0x2e3   :  { %1473 = vmatmul.mubr.bf16.vlgmr.msra.gmra.mxu0 %v1234_v6  ;;  %v3422_v6 = vld [vmem:[#allocation10 + $0x20] ss:$8 sps:$4 sm:$0xff]  }
 0x2e4   :  { %1939 = vmatpush1.bf16.msra.mxu0 %v3359_v53  ;;  %v3433_v53 = vld [vmem:[#allocation10 + $0xf4] ss:$8 sps:$4 sm:$0xff]  }
 0x2e5   :  { %1940 = vmatprep.subr.bf16.mxu0 %v3364_v58  ;;  %v3436_v58 = vld [vmem:[#allocation10 + $0xe4] ss:$8 sps:$4 sm:$0xff]  }
 0x2e8   :  { %1941 = vmatpush1.bf16.msra.mxu0 %v3362_v56  ;;  %v3434_v56 = vld [vmem:[#allocation10 + $0xe0] ss:$8 sps:$4 sm:$0xff]  }
 0x2e9   :  { %1942 = vmatprep.subr.bf16.mxu0 %v3367_v60  ;;  %v3439_v60 = vld [vmem:[#allocation10 + $0xd4] ss:$8 sps:$4 sm:$0xff]  }
 0x2ec   :  { %1943 = vmatpush1.bf16.msra.mxu0 %v3365_v61  ;;  %v3437_v61 = vld [vmem:[#allocation10 + $0xd0] ss:$8 sps:$4 sm:$0xff]  }
 0x2ed   :  { %1944 = vmatprep.subr.bf16.mxu0 %v3370_v62  ;;  %v3442_v62 = vld [vmem:[#allocation10 + $0xc4] ss:$8 sps:$4 sm:$0xff]  }
 0x2f0   :  { %1945 = vmatpush1.bf16.msra.mxu0 %v3368_v4  ;;  %v3440_v4 = vld [vmem:[#allocation10 + $0xc0] ss:$8 sps:$4 sm:$0xff]  }
 0x2f1   :  { %1946 = vmatprep.subr.bf16.mxu0 %v3373_v1  ;;  %v3445_v1 = vld [vmem:[#allocation10 + $0xb4] ss:$8 sps:$4 sm:$0xff]  }
 0x2f4   :  { %1947 = vmatpush1.bf16.msra.mxu0 %v3371_v21  ;;  %v3443_v21 = vld [vmem:[#allocation10 + $0xb0] ss:$8 sps:$4 sm:$0xff]  }
 0x2f5   :  { %1948 = vmatprep.subr.bf16.mxu0 %v3376_v15  ;;  %v3448_v15 = vld [vmem:[#allocation10 + $0xa4] ss:$8 sps:$4 sm:$0xff]  }
 0x2f8   :  { %1949 = vmatpush1.bf16.msra.mxu0 %v3374_v5  ;;  %v3446_v5 = vld [vmem:[#allocation10 + $0xa0] ss:$8 sps:$4 sm:$0xff]  }
 0x2f9   :  { %1950 = vmatprep.subr.bf16.mxu0 %v3379_v0  ;;  %v1517_v0 = vld [vmem:[%s4684_s9] sm:$0x3] }
 0x2fc   :  { %1951 = vmatpush1.bf16.msra.mxu0 %v3377_v8  ;;  %v1522_v8 = vrot.slane %v1517_v0, %v4129_v55 }
 0x2fd   :  { %1952 = vmatprep.subr.bf16.mxu0 %v3382_v17  ;;  %v1526_v17 = vrot.slane %v1517_v0, %v4135_v57  ;;  %v2422_v0 = vld [vmem:[#allocation16 + $0x60] sm:$0xff] }
 0x300   :  { %1953 = vmatpush1.bf16.msra.mxu0 %v3380_v59 }
 0x301   :  { %1954 = vmatprep.subr.bf16.mxu0 %v3385_v63 }
 0x304   :  { %1955 = vmatpush2.bf16.msra.mxu0 %v3383_v11 }
 0x305   :  { %1956 = vmatprep.subr.bf16.mxu0 %v3388_v19 }
 0x308   :  { %1957 = vmatpush2.bf16.msra.mxu0 %v3386_v24 }
 0x309   :  { %1958 = vmatprep.subr.bf16.mxu0 %v3391_v25 }
 0x30c   :  { %1959 = vmatpush2.bf16.msra.mxu0 %v3389_v26 }
 0x30d   :  { %1960 = vmatprep.subr.bf16.mxu0 %v3394_v27 }
 0x310   :  { %1961 = vmatpush2.bf16.msra.mxu0 %v3392_v28 }
 0x311   :  { %1962 = vmatprep.subr.bf16.mxu0 %v3397_v29 }
 0x314   :  { %1963 = vmatpush2.bf16.msra.mxu0 %v3395_v30  ;;  %v3451_v30 = vld [vmem:[#allocation10 + $0x94] ss:$8 sps:$4 sm:$0xff]  }
 0x315   :  { %1964 = vmatprep.subr.bf16.mxu0 %v3400_v32  ;;  %v3449_v32 = vld [vmem:[#allocation10 + $0x90] ss:$8 sps:$4 sm:$0xff]  }
 0x318   :  { %1965 = vmatpush2.bf16.msra.mxu0 %v3398_v34  ;;  %v3454_v34 = vld [vmem:[#allocation10 + $0x84] ss:$8 sps:$4 sm:$0xff]  }
 0x319   :  { %1966 = vmatprep.subr.bf16.mxu0 %v3403_v49  ;;  %v1766_v49 = vld [vmem:[#allocation9] sm:$0x3] }
 0x31c   :  { %1967 = vmatpush2.bf16.msra.mxu0 %v3401_v50  ;;  %v1771_v50 = vrot.slane %v1766_v49, %v4129_v55 }
 0x31d   :  { %1968 = vmatprep.subr.bf16.mxu0 %v3406_v51  ;;  %v1775_v51 = vrot.slane %v1766_v49, %v4135_v57  ;;  %v2412_v49 = vld [vmem:[#allocation16 + $0x10] sm:$0xff] }
 0x320   :  { %1969 = vmatpush2.bf16.msra.mxu0 %v3404_v52 }
 0x3a3   :  { %v1474_v43 = vpop.f32.mrf.mxu0 }
 0x3a4   :  { %v1475_v46 = vadd.f32 %v1474_v43, %v1273_v36  ;;  %v3455_v36 = vld [vmem:[%s4689_s14 + $0x78] sm:$0xff]   ;;  %v3457_v43 = vld [vmem:[%s4689_s14 + $0x70] sm:$0xff]  }
 0x3a5   :  { %v1476_v47 = vpop.f32.mrf.mxu0  ;;  %3166 = vmatprep.subr.bf16.mxu0 %v3455_v36 }
 0x3a6   :  { %v1477_v48 = vadd.f32 %v1476_v47, %v1277_v38  ;;  %v1481_v42 = vmax.f32 %v1475_v46, 0.0  ;;  %v3456_v38 = vld [vmem:[%s4689_s14 + $0x38] sm:$0xff]   ;;  %v3458_v46 = vld [vmem:[%s4689_s14 + $0x30] sm:$0xff]   ;;  %v3459_v47 = vld [vmem:[%s4689_s14 + $0x68] sm:$0xff]  }
 0x3a7   :  { %v1478_v44 = vpop.f32.mrf.mxu0 }
 0x3a8   :  { %v1482_v45 = vmax.f32 %v1477_v48, 0.0  ;;  %v1483_v40 = vpack.c.bf16 %v1481_v42, %v1481_v42  ;;  %v3460_v48 = vld [vmem:[%s4689_s14 + $0x28] sm:$0xff]   ;;  %v3461_v42 = vld [vmem:[%s4689_s14 + $0x60] sm:$0xff]  }
 0x3a9   :  { %v1479_v31 = vpop.f32.mrf.mxu0  ;;  %v3462_v44 = vld [vmem:[%s4689_s14 + $0x20] sm:$0xff]  }
 0x3aa   :  { %v1484_v33 = vpack.c.bf16 %v1482_v45, %v1482_v45  ;;  %v3463_v45 = vld [vmem:[%s4689_s14 + $0x58] sm:$0xff]  }
 0x3ab   :  { %v3464_v31 = vld [vmem:[%s4689_s14 + $0x18] sm:$0xff]  }
 0x3ac   :  { %1721 = vmatprep.mubr.bf16.mxu1 %v1484_v33  ;;  %v3465_v33 = vld [vmem:[%s4689_s14 + $0x50] sm:$0xff]  }
 0x3ad   :  { %1722 = vmatmul.mubr.bf16.vlgmr.msra.gmra.mxu1 %v1483_v40  ;;  %v3466_v40 = vld [vmem:[%s4689_s14 + $0x10] sm:$0xff]  }
 0x3ae   :  { %2188 = vmatpush1.bf16.msra.mxu1 %v3407_v37 }
 0x3af   :  { %2189 = vmatprep.subr.bf16.mxu1 %v3412_v39 }
 0x3b2   :  { %2190 = vmatpush1.bf16.msra.mxu1 %v3410_v12 }
 0x3b3   :  { %2191 = vmatprep.subr.bf16.mxu1 %v3415_v16 }
 0x3b6   :  { %2192 = vmatpush1.bf16.msra.mxu1 %v3413_v3 }
 0x3b7   :  { %2193 = vmatprep.subr.bf16.mxu1 %v3418_v9 }
 0x3ba   :  { %2194 = vmatpush1.bf16.msra.mxu1 %v3416_v10 }
 0x3bb   :  { %2195 = vmatprep.subr.bf16.mxu1 %v3421_v13 }
 0x3be   :  { %2196 = vmatpush1.bf16.msra.mxu1 %v3419_v20  ;;  %v4710_v20 = vmov 0  }
 0x3bf   :  { %2197 = vmatprep.subr.bf16.mxu1 %v3424_v2  ;;  %v3467_v2 = vld [vmem:[%s4689_s14 + $0x48] sm:$0xff]  }
 0x3c2   :  { %2198 = vmatpush1.bf16.msra.mxu1 %v3422_v6  ;;  %v3468_v6 = vld [vmem:[%s4689_s14 + $0x8] sm:$0xff]  }
 0x3c3   :  { %2199 = vmatprep.subr.bf16.mxu1 %v3427_v7  ;;  %v3469_v7 = vld [vmem:[%s4689_s14 + $0x40] sm:$0xff]  }
 0x3c6   :  { %2200 = vmatpush1.bf16.msra.mxu1 %v3425_v14  ;;  %v3470_v14 = vld [vmem:[%s4689_s14] sm:$0xff]  }
 0x3c7   :  { %2201 = vmatprep.subr.bf16.mxu1 %v3430_v22  ;;  %v2015_v22 = vld [vmem:[#allocation12] sm:$0x3] }
 0x3ca   :  { %2202 = vmatpush1.bf16.msra.mxu1 %v3428_v18  ;;  %v2020_v18 = vrot.slane %v2015_v22, %v4129_v55 }
 0x3cb   :  { %2203 = vmatprep.subr.bf16.mxu1 %v3433_v53  ;;  %v2024_v53 = vrot.slane %v2015_v22, %v4135_v57 }
 0x3ce   :  { %2204 = vmatpush2.bf16.msra.mxu1 %v3431_v23 }
 0x3cf   :  { %2205 = vmatprep.subr.bf16.mxu1 %v3436_v58 }
 0x3d2   :  { %2206 = vmatpush2.bf16.msra.mxu1 %v3434_v56 }
 0x3d3   :  { %2207 = vmatprep.subr.bf16.mxu1 %v3439_v60 }
 0x3d6   :  { %2208 = vmatpush2.bf16.msra.mxu1 %v3437_v61 }
 0x3d7   :  { %2209 = vmatprep.subr.bf16.mxu1 %v3442_v62 }
 0x3da   :  { %2210 = vmatpush2.bf16.msra.mxu1 %v3440_v4 }
 0x3db   :  { %2211 = vmatprep.subr.bf16.mxu1 %v3445_v1 }
 0x3de   :  { %2212 = vmatpush2.bf16.msra.mxu1 %v3443_v21 }
 0x3df   :  { %2213 = vmatprep.subr.bf16.mxu1 %v3448_v15 }
 0x3e2   :  { %2214 = vmatpush2.bf16.msra.mxu1 %v3446_v5  ;;  %v2418_v5 = vld [vmem:[#allocation16 + $0x40] sm:$0xff] }
 0x3e3   :  { %2215 = vmatprep.subr.bf16.mxu1 %v3451_v30  ;;  %v3699_v30 = vmov 1  }
 0x3e6   :  { %2216 = vmatpush2.bf16.msra.mxu1 %v3449_v32 }
 0x3e7   :  { %2217 = vmatprep.subr.bf16.mxu1 %v3454_v34  ;;  %v3129_v34 = vld [vmem:[#allocation13] ss:$0 sm:$0xff] }
 0x3ea   :  { %2218 = vmatpush2.bf16.msra.mxu1 %v3452_v35 }
 0x46d   :  { %v1723_v59 = vpop.f32.mrf.mxu1 }
 0x46e   :  { %v1724_v63 = vadd.f32 %v1723_v59, %v1522_v8  ;;  %v3155_v8 = vcombine.high %v2418_v5, %v2422_v0  ;;  %v2410_v59 = vld [vmem:[#allocation16] sm:$0xff] }
 0x46f   :  { %v1725_v11 = vpop.f32.mrf.mxu1 }
 0x470   :  { %v1726_v19 = vadd.f32 %v1725_v11, %v1526_v17  ;;  %v1730_v24 = vmax.f32 %v1724_v63, 0.0  ;;  %v3154_v17 = vcombine.low %v2418_v5, %v2422_v0  ;;  %2522 = vmatprep.subr.bf16.mxu1 %v3155_v8  ;;  %v2414_v63 = vld [vmem:[#allocation16 + $0x20] sm:$0xff] }
 0x471   :  { %v1727_v25 = vpop.f32.mrf.mxu1  ;;  %v3147_v11 = vcombine.high %v2410_v59, %v2414_v63 }
 0x472   :  { %v1731_v26 = vmax.f32 %v1726_v19, 0.0  ;;  %v1732_v29 = vpack.c.bf16 %v1730_v24, %v1730_v24  ;;  %v3146_v19 = vcombine.low %v2410_v59, %v2414_v63  ;;  %v2419_v24 = vld [vmem:[#allocation16 + $0x48] sm:$0xff] }
 0x473   :  { %v1728_v27 = vpop.f32.mrf.mxu1  ;;  %v2423_v25 = vld [vmem:[#allocation16 + $0x68] sm:$0xff] }
 0x474   :  { %v1733_v28 = vpack.c.bf16 %v1731_v26, %v1731_v26  ;;  %v3156_v26 = vcombine.low %v2419_v24, %v2423_v25  ;;  %v3157_v27 = vcombine.high %v2419_v24, %v2423_v25 }
 0x476   :  { %1970 = vmatprep.mubr.bf16.mxu0 %v1733_v28  ;;  %v2407_v28 = vld [vmem:[%s4711_s16] sm:$0xff] }
 0x477   :  { %1971 = vmatmul.mubr.bf16.vlgmr.msra.gmra.mxu0 %v1732_v29  ;;  %2726 = vperm.xlu0 %3205, %v2407_v28   ;;  %v3698_v29 = vmov 2  }
 0x478   :  { %3167 = vmatpush3.bf16.msra.mxu0 %v3456_v38  ;;  %3207 = vset.pattern.permute.xlu1 %v3698_v29 }
 0x479   :  { %3168 = vmatprep.subr.bf16.mxu0 %v3457_v43  ;;  %2852 = vperm.xlu1 %3207, %v2407_v28   ;;  %v2411_v43 = vld [vmem:[#allocation16 + $0x8] sm:$0xff] }
 0x47b   :  { %3206 = vset.pattern.permute.xlu0 %v3699_v30 }
 0x47c   :  { %3169 = vmatpush3.bf16.msra.mxu0 %v3458_v46  ;;  %2789 = vperm.xlu0 %3206, %v2407_v28   ;;  %v2415_v46 = vld [vmem:[#allocation16 + $0x28] sm:$0xff] }
 0x47d   :  { %3170 = vmatprep.subr.bf16.mxu0 %v3459_v47 }
 0x480   :  { %3171 = vmatpush3.bf16.msra.mxu0 %v3460_v48  ;;  %3208 = vset.pattern.permute.xlu0 %v3698_v29 }
 0x481   :  { %3172 = vmatprep.subr.bf16.mxu0 %v3461_v42 }
 0x484   :  { %3173 = vmatpush3.bf16.msra.mxu0 %v3462_v44  ;;  %v3149_v44 = vcombine.high %v2411_v43, %v2415_v46 }
 0x485   :  { %3174 = vmatprep.subr.bf16.mxu0 %v3463_v45  ;;  %v2420_v45 = vld [vmem:[#allocation16 + $0x50] sm:$0xff] }
 0x488   :  { %3175 = vmatpush3.bf16.msra.mxu0 %v3464_v31  ;;  %v2424_v31 = vld [vmem:[#allocation16 + $0x70] sm:$0xff] }
 0x489   :  { %3176 = vmatprep.subr.bf16.mxu0 %v3465_v33  ;;  %v3148_v33 = vcombine.low %v2411_v43, %v2415_v46 }
 0x48c   :  { %3177 = vmatpush3.bf16.msra.mxu0 %v3466_v40  ;;  %v3159_v40 = vcombine.high %v2420_v45, %v2424_v31 }
 0x48d   :  { %3178 = vmatprep.subr.bf16.mxu0 %v3467_v2 }
 0x490   :  { %3179 = vmatpush3.bf16.msra.mxu0 %v3468_v6  ;;  %v4566_v6 = vld [vmem:[#allocation15] ss:$4 sm:$0xff] }
 0x491   :  { %3180 = vmatprep.subr.bf16.mxu0 %v3469_v7  ;;  %v4571_v7 = vld [vmem:[%s4693_s18] sm:$0xff]  ;;  %v2733_v22 = vrot.slane %v4566_v6, %v4129_v55 }
 0x494   :  { %3181 = vmatpush3.bf16.msra.mxu0 %v3470_v14  ;;  %v4573_v14 = vld [vmem:[#allocation15 + $0x1] ss:$4 sm:$0xff] }
 0x4f2   :  { %v4564_v2 = vpop.permute.xlu0 %2726 }
 0x537   :  { %v1972_v52 = vpop.f32.mrf.mxu0 }
 0x538   :  { %v1973_v37 = vadd.f32 %v1972_v52, %v1771_v50  ;;  %v2416_v50 = vld [vmem:[#allocation16 + $0x30] sm:$0xff] }
 0x539   :  { %v1974_v41 = vpop.f32.mrf.mxu0  ;;  %v3151_v52 = vcombine.high %v2412_v49, %v2416_v50 }
 0x53a   :  { %v1975_v39 = vadd.f32 %v1974_v41, %v1775_v51  ;;  %v1979_v12 = vmax.f32 %v1973_v37, 0.0  ;;  %v3158_v51 = vcombine.low %v2420_v45, %v2424_v31  ;;  %v2421_v37 = vld [vmem:[#allocation16 + $0x58] sm:$0xff]  ;;  %v2697_v45 = vsub.s32 5, %v4126_v54 }
 0x53b   :  { %v1976_v16 = vpop.f32.mrf.mxu0  ;;  %v2425_v41 = vld [vmem:[#allocation16 + $0x78] sm:$0xff] }
 0x53c   :  { %v1980_v3 = vmax.f32 %v1975_v39, 0.0  ;;  %v1981_v13 = vpack.c.bf16 %v1979_v12, %v1979_v12  ;;  %v3150_v39 = vcombine.low %v2412_v49, %v2416_v50  ;;  %v3161_v12 = vcombine.high %v2421_v37, %v2425_v41  ;;  %v2413_v16 = vld [vmem:[#allocation16 + $0x18] sm:$0xff] }
 0x53d   :  { %v1977_v9 = vpop.f32.mrf.mxu0 }
 0x53e   :  { %v1982_v10 = vpack.c.bf16 %v1980_v3, %v1980_v3  ;;  %v2417_v3 = vld [vmem:[#allocation16 + $0x38] sm:$0xff]  ;;  %v3160_v9 = vcombine.low %v2421_v37, %v2425_v41 }
 0x540   :  { %2219 = vmatprep.mubr.bf16.mxu1 %v1982_v10  ;;  %v3153_v10 = vcombine.high %v2413_v16, %v2417_v3 }
 0x541   :  { %2220 = vmatmul.mubr.bf16.vlgmr.msra.gmra.mxu1 %v1981_v13  ;;  %v3152_v13 = vcombine.low %v2413_v16, %v2417_v3 }
 0x542   :  { %2542 = vmatprep.mubr.bf16.mxu1 %v4710_v20  ;;  %2523 = vmatpush1.bf16.msra.mxu1 %v3154_v17 }
 0x543   :  { %2524 = vmatprep.subr.bf16.mxu1 %v3147_v11 }
 0x546   :  { %2525 = vmatpush1.bf16.msra.mxu1 %v3146_v19 }
 0x547   :  { %2563 = vmatprep.subr.bf16.mxu1 %v3157_v27 }
 0x601   :  { %v2221_v23 = vpop.f32.mrf.mxu1 }
 0x602   :  { %v2222_v58 = vadd.f32 %v2221_v23, %v2020_v18  ;;  %v4577_v18 = vld [vmem:[#allocation15 + $0x2] ss:$4 sm:$0xff]  ;;  %v2737_v23 = vrot.slane %v4566_v6, %v4135_v57 }
 0x603   :  { %v2223_v56 = vpop.f32.mrf.mxu1  ;;  %v2863_v17 = vrot.slane %v4577_v18, %v4135_v57 }
 0x604   :  { %v2224_v60 = vadd.f32 %v2223_v56, %v2024_v53  ;;  %v2228_v61 = vmax.f32 %v2222_v58, 0.0  ;;  %v2796_v53 = vrot.slane %v4573_v14, %v4129_v55  ;;  %v4585_v58 = vpop.permute.xlu0 %2789  ;;  %v2685_v56 = vsub.s32 2, %v4126_v54 }
 0x605   :  { %v2225_v62 = vpop.f32.mrf.mxu1  ;;  %v2771_v8 = vmul.f32 %v2737_v23, %v4564_v2 }
 0x606   :  { %v2229_v4 = vmax.f32 %v2224_v60, 0.0  ;;  %v2230_v15 = vpack.c.bf16 %v2228_v61, %v2228_v61  ;;  %v2770_v60 = vmul.f32 %v2733_v22, %v4564_v2  ;;  %v2682_v61 = vrot.slane %v4571_v7, %v4135_v57 }
 0x607   :  { %v2226_v1 = vpop.f32.mrf.mxu1  ;;  %v2800_v62 = vrot.slane %v4573_v14, %v4135_v57  ;;  %v2833_v0 = vmul.f32 %v2796_v53, %v4585_v58  ;;  %v2741_v63 = vrot.slane %v4566_v6, %v2685_v56  ;;  %v2686_v57 = vrot.slane %v4571_v7, %v2685_v56 }
 0x608   :  { %v2231_v21 = vpack.c.bf16 %v2229_v4, %v2229_v4  ;;  %v2859_v4 = vrot.slane %v4577_v18, %v4129_v55 }
 0x60a   :  { %2399 = vmatprep.mubr.bf16.mxu0 %v2231_v21  ;;  %v4595_v21 = vpop.permute.xlu1 %2852 }
 0x60b   :  { %2400 = vmatmul.mubr.bf16.vlgmr.msra.gmra.mxu0 %v2230_v15  ;;  %v2689_v15 = vsub.s32 3, %v4126_v54  ;;  %v2896_v24 = vmul.f32 %v2859_v4, %v4595_v21  ;;  %v2897_v30 = vmul.f32 %v2863_v17, %v4595_v21  ;;  %v2698_v4 = vrot.slane %v4571_v7, %v2697_v45 }
 0x60d   :  { %v2745_v27 = vrot.slane %v4566_v6, %v2689_v15  ;;  %v2690_v46 = vrot.slane %v4571_v7, %v2689_v15  ;;  %v2871_v49 = vrot.slane %v4577_v18, %v2689_v15 }
 0x60f   :  { %v2899_v22 = vmul.f32 %v2871_v49, %v4595_v21 }
 0x6cb   :  { %v3182_v32 = vpop.f32.mrf.mxu0 }
 0x6cd   :  { %v3183_v35 = vpop.f32.mrf.mxu0 }
 0x6ce   :  { %v3184_v36 = vadd.f32 %v3183_v35, %v3182_v32  ;;  %v2867_v35 = vrot.slane %v4577_v18, %v2685_v56 }
 0x6cf   :  { %v3185_v38 = vpop.f32.mrf.mxu0 }
 0x6d0   :  { %v2402_v47 = vadd.f32 %v3184_v36, %v3129_v34  ;;  %v2772_v34 = vmul.f32 %v2741_v63, %v4564_v2  ;;  %v2693_v36 = vsub.s32 4, %v4126_v54  ;;  %v2898_v50 = vmul.f32 %v2867_v35, %v4595_v21 }
 0x6d1   :  { %v3186_v48 = vpop.f32.mrf.mxu0  ;;  %v2879_v63 = vrot.slane %v4577_v18, %v2697_v45 }
 0x6d2   :  { %v2409_v42 = vpack.c.bf16 %v2402_v47, %v2402_v47  ;;  %v2808_v47 = vrot.slane %v4573_v14, %v2689_v15  ;;  %v2812_v3 = vrot.slane %v4573_v14, %v2693_v36 }
 0x6d4   :  { %3162 = vmatmul.mubr.msk.bf16.vlgmr.msra.gmra.mxu1 %vm2506_vm2, %v2409_v42 }
 0x6d5   :  { %2564 = vmatpush1.bf16.msra.mxu1 %v3156_v26  ;;  %2583 = vmatprep.mubr.bf16.mxu1 %v4710_v20  ;;  %v2804_v26 = vrot.slane %v4573_v14, %v2685_v56  ;;  %v2875_v56 = vrot.slane %v4577_v18, %v2693_v36 }
 0x6d6   :  { %2565 = vmatprep.subr.bf16.mxu1 %v3149_v44  ;;  %v2773_v44 = vmul.f32 %v2745_v27, %v4564_v2 }
 0x6d9   :  { %2566 = vmatpush1.bf16.msra.mxu1 %v3148_v33 }
 0x6da   :  { %2604 = vmatprep.subr.bf16.mxu1 %v3159_v40 }
 0x6dc   :  { %3163 = vmatmul.mubr.msk.bf16.vlgmr.msra.gmra.mxu1 %vm2506_vm2, %v2409_v42 }
 0x6dd   :  { %2605 = vmatpush1.bf16.msra.mxu1 %v3158_v51  ;;  %2624 = vmatprep.mubr.bf16.mxu1 %v4710_v20 }
 0x6de   :  { %2606 = vmatprep.subr.bf16.mxu1 %v3151_v52  ;;  %v2749_v52 = vrot.slane %v4566_v6, %v2693_v36 }
 0x6e0   :  { %v2774_v23 = vmul.f32 %v2749_v52, %v4564_v2 }
 0x6e1   :  { %2607 = vmatpush1.bf16.msra.mxu1 %v3150_v39 }
 0x6e2   :  { %2645 = vmatprep.subr.bf16.mxu1 %v3161_v12  ;;  %v2836_v12 = vmul.f32 %v2808_v47, %v4585_v58 }
 0x6e4   :  { %3164 = vmatmul.mubr.msk.bf16.vlgmr.msra.gmra.mxu1 %vm2506_vm2, %v2409_v42 }
 0x6e5   :  { %2646 = vmatpush1.bf16.msra.mxu1 %v3160_v9  ;;  %2665 = vmatprep.mubr.bf16.mxu1 %v4710_v20  ;;  %v2678_v20 = vrot.slane %v4571_v7, %v4129_v55  ;;  %v2834_v55 = vmul.f32 %v2800_v62, %v4585_v58  ;;  %v2753_v9 = vrot.slane %v4566_v6, %v2697_v45 }
 0x6e6   :  { %2647 = vmatprep.subr.bf16.mxu1 %v3153_v10 }
 0x6e9   :  { %2648 = vmatpush1.bf16.msra.mxu1 %v3152_v13 }
 0x6ec   :  { %3165 = vmatmul.mubr.msk.bf16.vlgmr.msra.gmra.mxu1 %vm2506_vm2, %v2409_v42  ;;  %v2835_v42 = vmul.f32 %v2804_v26, %v4585_v58 }
 0x794   :  { %v2544_v1 = vpop.f32.mrf.mxu1 }
 0x795   :  { %v2715_v5 = vadd.f32 %v2678_v20, %v2544_v1  ;;  %v2694_v20 = vrot.slane %v4571_v7, %v2693_v36  ;;  %v2816_v1 = vrot.slane %v4573_v14, %v2697_v45 }
 0x796   :  { %v2546_v59 = vpop.f32.mrf.mxu1 }
 0x797   :  { %v2778_v11 = vadd.f32 %v2770_v60, %v2715_v5  ;;  %v2716_v19 = vadd.f32 %v2682_v61, %v2546_v59  ;;  %v2701_v60 = vsub.s32 6, %v4126_v54  ;;  %v2837_v5 = vmul.f32 %v2812_v3, %v4585_v58 }
 0x798   :  { %v2548_v25 = vpop.f32.mrf.mxu1 }
 0x799   :  { %v2841_v28 = vadd.f32 %v2833_v0, %v2778_v11  ;;  %v2779_v29 = vadd.f32 %v2771_v8, %v2716_v19  ;;  %v2775_v0 = vmul.f32 %v2753_v9, %v4564_v2  ;;  %v2900_v11 = vmul.f32 %v2875_v56, %v4595_v21 }
 0x79a   :  { %v2549_v32 = vpop.f32.mrf.mxu1 }
 0x79b   :  { %v2842_v38 = vadd.f32 %v2834_v55, %v2779_v29  ;;  %v2904_v43 = vadd.f32 %v2896_v24, %v2841_v28  ;;  %v2757_v55 = vrot.slane %v4566_v6, %v2701_v60  ;;  %v2705_v24 = vsub.s32 7, %v4126_v54 }
 0x79c   :  { %v2585_v48 = vpop.f32.mrf.mxu1  ;;  %v2838_v28 = vmul.f32 %v2816_v1, %v4585_v58  ;;  %v2901_v54 = vmul.f32 %v2879_v63, %v4595_v21 }
 0x79d   :  { %v2905_v31 = vadd.f32 %v2897_v30, %v2842_v38  ;;  %v2912_v33 = vmax.f32 %v2904_v43, 0.0  ;;  %v2717_v40 = vadd.f32 %v2686_v57, %v2585_v48  ;;  %v2820_v30 = vrot.slane %v4573_v14, %v2701_v60 }
 0x79e   :  { %v2587_v51 = vpop.f32.mrf.mxu1  ;;  %v2776_v36 = vmul.f32 %v2757_v55, %v4564_v2  ;;  %v2883_v38 = vrot.slane %v4577_v18, %v2701_v60  ;;  %v2761_v43 = vrot.slane %v4566_v6, %v2705_v24  ;;  %v2706_v48 = vrot.slane %v4571_v7, %v2705_v24 }
 0x79f   :  { %v2913_v37 = vmax.f32 %v2905_v31, 0.0  ;;  %2920 = vst [vmem:[%s4694_s19] sm:$0xff] %v2912_v33  ;;  %v2780_v41 = vadd.f32 %v2772_v34, %v2717_v40  ;;  %v2718_v39 = vadd.f32 %v2690_v46, %v2587_v51  ;;  %v2702_v34 = vrot.slane %v4571_v7, %v2701_v60 }
 0x7a0   :  { %v2589_v16 = vpop.f32.mrf.mxu1  ;;  %v2839_v45 = vmul.f32 %v2820_v30, %v4585_v58  ;;  %v2887_v49 = vrot.slane %v4577_v18, %v2705_v24  ;;  %v2777_v52 = vmul.f32 %v2761_v43, %v4564_v2 }
 0x7a1   :  { %2921 = vst [vmem:[%s4694_s19 + $0x8] sm:$0xff] %v2913_v37  ;;  %v2843_v10 = vadd.f32 %v2835_v42, %v2780_v41  ;;  %v2781_v13 = vadd.f32 %v2773_v44, %v2718_v39  ;;  %v2824_v42 = vrot.slane %v4573_v14, %v2705_v24 }
 0x7a2   :  { %v2590_v53 = vpop.f32.mrf.mxu1 }
 0x7a3   :  { %v2906_v61 = vadd.f32 %v2898_v50, %v2843_v10  ;;  %v2844_v62 = vadd.f32 %v2836_v12, %v2781_v13  ;;  %v2902_v50 = vmul.f32 %v2883_v38, %v4595_v21  ;;  %v2840_v37 = vmul.f32 %v2824_v42, %v4585_v58 }
 0x7a4   :  { %v2626_v15 = vpop.f32.mrf.mxu1  ;;  %v2903_v12 = vmul.f32 %v2887_v49, %v4595_v21 }
 0x7a5   :  { %v2914_v8 = vmax.f32 %v2906_v61, 0.0  ;;  %v2907_v17 = vadd.f32 %v2899_v22, %v2844_v62  ;;  %v2719_v59 = vadd.f32 %v2694_v20, %v2626_v15 }
 0x7a6   :  { %v2628_v19 = vpop.f32.mrf.mxu1 }
 0x7a7   :  { %2922 = vst [vmem:[%s4694_s19 + $0x10] sm:$0xff] %v2914_v8  ;;  %v2915_v25 = vmax.f32 %v2907_v17, 0.0  ;;  %v2782_v26 = vadd.f32 %v2774_v23, %v2719_v59  ;;  %v2720_v27 = vadd.f32 %v2698_v4, %v2628_v19 }
 0x7a8   :  { %v2630_v29 = vpop.f32.mrf.mxu1 }
 0x7a9   :  { %2923 = vst [vmem:[%s4694_s19 + $0x18] sm:$0xff] %v2915_v25  ;;  %v2845_v57 = vadd.f32 %v2837_v5, %v2782_v26  ;;  %v2783_v32 = vadd.f32 %v2775_v0, %v2720_v27 }
 0x7aa   :  { %v2631_v35 = vpop.f32.mrf.mxu1 }
 0x7ab   :  { %v2908_v46 = vadd.f32 %v2900_v11, %v2845_v57  ;;  %v2846_v47 = vadd.f32 %v2838_v28, %v2783_v32 }
 0x7ac   :  { %v2667_v44 = vpop.f32.mrf.mxu1 }
 0x7ad   :  { %v2916_v31 = vmax.f32 %v2908_v46, 0.0  ;;  %v2909_v33 = vadd.f32 %v2901_v54, %v2846_v47  ;;  %v2721_v40 = vadd.f32 %v2702_v34, %v2667_v44 }
 0x7ae   :  { %v2669_v51 = vpop.f32.mrf.mxu1 }
 0x7af   :  { %2924 = vst [vmem:[%s4695_s20] sm:$0xff] %v2916_v31  ;;  %v2917_v6 = vmax.f32 %v2909_v33, 0.0  ;;  %v2784_v7 = vadd.f32 %v2776_v36, %v2721_v40  ;;  %v2722_v14 = vadd.f32 %v2706_v48, %v2669_v51 }
 0x7b0   :  { %v2671_v41 = vpop.f32.mrf.mxu1 }
 0x7b1   :  { %2925 = vst [vmem:[%s4695_s20 + $0x8] sm:$0xff] %v2917_v6  ;;  %v2847_v18 = vadd.f32 %v2839_v45, %v2784_v7  ;;  %v2785_v39 = vadd.f32 %v2777_v52, %v2722_v14 }
 0x7b2   :  { %v2672_v16 = vpop.f32.mrf.mxu1 }
 0x7b3   :  { %v2910_v2 = vadd.f32 %v2902_v50, %v2847_v18  ;;  %v2848_v3 = vadd.f32 %v2840_v37, %v2785_v39 }
 0x7b5   :  { %v2918_v9 = vmax.f32 %v2910_v2, 0.0  ;;  %v2911_v10 = vadd.f32 %v2903_v12, %v2848_v3 }
 0x7b7   :  { %2926 = vst [vmem:[%s4695_s20 + $0x10] sm:$0xff] %v2918_v9  ;;  %v2919_v13 = vmax.f32 %v2911_v10, 0.0 }
 0x7b9   :  { %2927 = vst [vmem:[%s4695_s20 + $0x18] sm:$0xff] %v2919_v13 }
 0x7ba   :  { %2936 = vsyncpa [#allocation3], 1 }
 0x7bb   :  { %2937 = vsyncpa [#allocation5], 1 }
 0x7bc   :  { %2938 = vsyncpa [#allocation8], 1 }
 0x7bd   :  { %2939 = vsyncpa [#allocation11], 1 }
 0x7be   :  { %2940 = vsyncpa [#allocation14], 1 }
 0x7bf   :  { %2941 = vsyncpa [#allocation17], 1 }

</bundles_post_ra>
